<compile_context>
chip_gen: v5e
topology: v5e:2x2
jax: 0.10.0
libtpu: 0.0.40
codegen_flags: <defaults>
</compile_context>

<pallas_src>
import numpy as np
import jax
import jax.numpy as jnp
from jax.experimental import pallas as pl
from jax.experimental.pallas import tpu as pltpu

BN_EPS = 1e-5
MARGIN = 128          # lane-aligned margin on both sides of each activation slab
CPAD = 16             # channel padding (bf16 native sublane tile height)


# --------------------------- static geometry helpers -------------------------

def _pad_c(c):
    return ((c + CPAD - 1) // CPAD) * CPAD


def _geom(h, w):
    """Per-sample geometry of the zero-padded, flattened activation slab."""
    hp, wp = h + 2, w + 2
    return dict(H=h, W=w, Hp=hp, Wp=wp, P=hp * wp, MA=MARGIN, E=hp * wp + 2 * MARGIN)


def _tap_offsets(wp):
    return [(dy - 1) * wp + (dx - 1) for dy in range(3) for dx in range(3)]


def _valid_mask(g):
    """(1, P) f32 mask: 1 at real pixels, 0 at padding-ring positions."""
    mk = np.zeros((g['Hp'], g['Wp']), np.float32)
    mk[1:g['H'] + 1, 1:g['W'] + 1] = 1.0
    return jnp.asarray(mk.reshape(1, g['P']))


def _subsample_block(gi, go):
    """Per-sample (HpWp_in, HpWp_out) 0/1 matrix: stride-2 subsample + re-pad."""
    s = np.zeros((gi['P'], go['P']), np.float32)
    for io in range(go['H']):
        for jo in range(go['W']):
            pin = (2 * io + 1) * gi['Wp'] + (2 * jo + 1)
            pout = (io + 1) * go['Wp'] + (jo + 1)
            s[pin, pout] = 1.0
    return jnp.asarray(s, dtype=jnp.bfloat16)


# ------------------------------ in-kernel helpers ----------------------------

def _conv3x3(x_ext, w, g):
    """3x3 / stride-1 conv via a single im2col MXU matmul.

    x_ext: (Cin_pad, E) bf16 value (margins + padding ring are zero).
    w    : (Cout_pad, 9*Cin_pad) bf16 value, tap-major (ky, kx, cin), BN folded.
    Returns (Cout_pad, P) f32; entries at padding positions are garbage and
    must be masked by the caller.
    """
    ma, p = g['MA'], g['P']
    slab = jnp.concatenate(
        [x_ext[:, ma + off: ma + off + p] for off in _tap_offsets(g['Wp'])],
        axis=0)                                                # (9*Cin_pad, P) bf16
    return jnp.dot(w, slab, preferred_element_type=jnp.float32)


def _store_ext(s_ref, val, g):
    """Write (C, P) f32 `val` into the bf16 (C, E) scratch; zero margins only."""
    ma, p = g['MA'], g['P']
    c = s_ref.shape[0]
    zeros = jnp.zeros((c, ma), s_ref.dtype)
    s_ref[:, :ma] = zeros                       # left margin  (128 lanes, aligned)
    s_ref[:, ma + p:] = zeros                   # right margin (128 lanes)
    s_ref[:, ma:ma + p] = val.astype(s_ref.dtype)   # lane-aligned interior store
    return s_ref[...]


# ------------------------------- fused kernel --------------------------------

def _make_resnet_kernel(cfg):
    g0, blocks, n_in = cfg['g0'], cfg['blocks'], cfg['n_inputs']

    def kernel(*refs):
        ins = iter(refs[:n_in])
        out_ref = refs[n_in]
        scr = iter(refs[n_in + 1:])

        # ---- stem: conv3x3 + folded BN + ReLU ----
        x_ref = next(ins)
        w0, b0, mk0 = next(ins), next(ins), next(ins)
        y = _conv3x3(x_ref[0], w0[...], g0)
        y = jnp.maximum(y + b0[...], 0.0) * mk0[...]
        act = _store_ext(next(scr), y, g0)
        y_last, g_last = y, g0

        # ---- residual blocks ----
        for bi, blk in enumerate(blocks):
            gi, go, cp = blk['g_in'], blk['g_out'], blk['cout_pad']
            if not blk['has_shortcut']:
                w1, b1, w2, b2, mk = [next(ins) for _ in range(5)]
                h = _conv3x3(act, w1[...], gi)
                h = jnp.maximum(h + b1[...], 0.0) * mk[...]
                h_ext = _store_ext(next(scr), h, gi)
                y = _conv3x3(h_ext, w2[...], gi)
                res = act[:, gi['MA']:gi['MA'] + gi['P']].astype(jnp.float32)
                y = jnp.maximum(y + b2[...] + res, 0.0) * mk[...]
            else:
                w1, b1, w2, b2, wsc, bsc, sub, mk = [next(ins) for _ in range(8)]
                # stride-2 conv1 == stride-1 conv + per-sample 0/1 subsample matmul;
                # shortcut input rides in the same subsample matmul (stacked rows).
                hf = _conv3x3(act, w1[...], gi).astype(jnp.bfloat16)   # (cp, P_in)
                xc = act[:, gi['MA']:gi['MA'] + gi['P']]               # (cin_pad, P_in)
                both = jnp.concatenate([hf, xc], axis=0)               # (cp+cin_pad, P_in)
                sub_v = jnp.dot(both, sub[...],
                                preferred_element_type=jnp.float32)    # (cp+cin_pad, P_out)
                h = jnp.maximum(sub_v[:cp] + b1[...], 0.0) * mk[...]
                sc = jnp.dot(wsc[...], sub_v[cp:].astype(jnp.bfloat16),
                             preferred_element_type=jnp.float32) + bsc[...]
                h_ext = _store_ext(next(scr), h, go)
                y = _conv3x3(h_ext, w2[...], go)
                y = jnp.maximum(y + b2[...] + sc, 0.0) * mk[...]

            if bi != len(blocks) - 1:
                act = _store_ext(next(scr), y, go)
            y_last, g_last = y, go

        # ---- head: global average pool (lane reduction) + fully connected ----
        wfc, bfc = next(ins), next(ins)
        feat = jnp.sum(y_last, axis=1, keepdims=True) * (1.0 / float(g_last['H'] * g_last['W']))
        logits = jnp.dot(wfc[...], feat.astype(jnp.bfloat16),
                         preferred_element_type=jnp.float32) + bfc[...]
        out_ref[0] = logits

    return kernel


# ------------------------------ parameter folding ----------------------------

def _fold_conv_bn(w_oihw, gamma, beta, mean, var):
    """Fold eval-mode BN into the conv weight; pad channels to CPAD multiples.

    Returns w2d (cout_pad, kh*kw*cin_pad) bf16 (tap-major), shift (cout_pad, 1) f32.
    """
    cout, cin, kh, kw = w_oihw.shape
    cout_p, cin_p = _pad_c(cout), _pad_c(cin)
    scale = gamma / jnp.sqrt(var + BN_EPS)
    w = jnp.transpose(w_oihw, (0, 2, 3, 1)) * scale[:, None, None, None]  # (cout,kh,kw,cin)
    w = jnp.pad(w, ((0, cout_p - cout), (0, 0), (0, 0), (0, cin_p - cin)))
    w2d = w.reshape(cout_p, kh * kw * cin_p).astype(jnp.bfloat16)
    shift = jnp.pad(beta - mean * scale, (0, cout_p - cout)).reshape(-1, 1)
    return w2d, shift.astype(jnp.float32)


def init_params(key, plan, num_classes):
    keys = iter(jax.random.split(key, 256))

    def kaiming(shape, fan_in):
        return jax.random.normal(next(keys), shape, jnp.float32) * (2.0 / fan_in) ** 0.5

    def bn(c):
        # (gamma, beta, running_mean, running_var)
        return (jnp.ones((c,), jnp.float32), jnp.zeros((c,), jnp.float32),
                jnp.zeros((c,), jnp.float32), jnp.ones((c,), jnp.float32))

    current = plan[0][0]
    params = {'conv_w': kaiming((current, 3, 3, 3), 3 * 9), 'bn': bn(current), 'blocks': []}
    for seg, (filters, num_blocks) in enumerate(plan):
        for bi in range(num_blocks):
            downsample = seg > 0 and bi == 0
            blk = {
                'conv1_w': kaiming((filters, current, 3, 3), current * 9),
                'bn1': bn(filters),
                'conv2_w': kaiming((filters, filters, 3, 3), filters * 9),
                'bn2': bn(filters),
                'shortcut': ({'w': kaiming((filters, current, 1, 1), current),
                              'bn': bn(filters)}
                             if (downsample or current != filters) else None),
            }
            params['blocks'].append(blk)
            current = filters
    params['fc_w'] = kaiming((num_classes, current), current)   # (out, in)
    params['fc_b'] = jnp.zeros((num_classes,), jnp.float32)
    return params


# --------------------------------- forward -----------------------------------

def resnet_forward(params, x_nchw):
    n, cin0, h, w = x_nchw.shape
    g0 = _geom(h, w)
    cin0_p = _pad_c(cin0)

    inputs, in_specs, scratch, blocks_cfg = [], [], [], []

    def add_const(arr):
        inputs.append(arr)
        in_specs.append(pl.BlockSpec(arr.shape, lambda b, _nd=arr.ndim: (0,) * _nd))

    # Input: NCHW -> per-sample (N, Cpad, E0) bf16 slabs (zero ring + 128 margins).
    xp = jnp.pad(x_nchw.astype(jnp.float32),
                 ((0, 0), (0, cin0_p - cin0), (1, 1), (1, 1)))
    xp = xp.reshape(n, cin0_p, g0['P'])
    xp = jnp.pad(xp, ((0, 0), (0, 0), (g0['MA'], g0['MA']))).astype(jnp.bfloat16)
    inputs.append(xp)
    in_specs.append(pl.BlockSpec((1, cin0_p, g0['E']), lambda b: (b, 0, 0)))

    # Stem conv + BN.
    w0, b0 = _fold_conv_bn(params['conv_w'], *params['bn'])
    c0_p = w0.shape[0]
    add_const(w0); add_const(b0); add_const(_valid_mask(g0))
    scratch.append(pltpu.VMEM((c0_p, g0['E']), jnp.bfloat16))

    g_cur, c_cur_p = g0, c0_p
    nblocks = len(params['blocks'])
    for bi, blk in enumerate(params['blocks']):
        w1, b1 = _fold_conv_bn(blk['conv1_w'], *blk['bn1'])
        w2, b2 = _fold_conv_bn(blk['conv2_w'], *blk['bn2'])
        cout_p = w1.shape[0]
        has_sc = blk['shortcut'] is not None
        if has_sc:
            # Reference module's projection shortcut is always a 1x1 / stride-2 conv.
            assert g_cur['H'] % 2 == 0 and g_cur['W'] % 2 == 0
            g_out = _geom(g_cur['H'] // 2, g_cur['W'] // 2)
            wsc, bsc = _fold_conv_bn(blk['shortcut']['w'], *blk['shortcut']['bn'])
            for a in (w1, b1, w2, b2, wsc, bsc,
                      _subsample_block(g_cur, g_out), _valid_mask(g_out)):
                add_const(a)
        else:
            g_out = g_cur
            for a in (w1, b1, w2, b2, _valid_mask(g_out)):
                add_const(a)
        scratch.append(pltpu.VMEM((cout_p, g_out['E']), jnp.bfloat16))      # conv1 out
        if bi != nblocks - 1:
            scratch.append(pltpu.VMEM((cout_p, g_out['E']), jnp.bfloat16))  # block out
        blocks_cfg.append(dict(g_in=g_cur, g_out=g_out, cout_pad=cout_p,
                               has_shortcut=has_sc))
        g_cur, c_cur_p = g_out, cout_p

    # Head: FC weight padded to the (padded) feature width, pre-cast to bf16.
    num_classes, c_last = params['fc_w'].shape
    add_const(jnp.pad(params['fc_w'],
                      ((0, 0), (0, c_cur_p - c_last))).astype(jnp.bfloat16))
    add_const(params['fc_b'].reshape(num_classes, 1).astype(jnp.float32))

    cfg = dict(g0=g0, blocks=blocks_cfg, n_inputs=len(inputs))
    kernel = _make_resnet_kernel(cfg)

    out = pl.pallas_call(
        kernel,
        grid=(n,),
        out_shape=jax.ShapeDtypeStruct((n, num_classes, 1), jnp.float32),
        in_specs=in_specs,
        out_specs=pl.BlockSpec((1, num_classes, 1), lambda b: (b, 0, 0)),
        scratch_shapes=scratch,
        compiler_params=pltpu.CompilerParams(
            dimension_semantics=("parallel",),          # v7x: one sample per core
            vmem_limit_bytes=32 * 1024 * 1024),
    )(*inputs)
    return out.reshape(n, num_classes)


# ----------------------------------- main -------------------------------------

if __name__ == "__main__":
    plan = [(4, 1), (8, 1)]   # (filters, num_blocks) per segment
    num_classes = 10

    key = jax.random.PRNGKey(0)
    pkey, xkey = jax.random.split(key)
    params = init_params(pkey, plan, num_classes)

    x = jax.random.normal(xkey, (2, 3, 16, 16), jnp.float32)   # NCHW like PyTorch
    forward = jax.jit(resnet_forward)
    logits = forward(params, x)
    logits = jax.block_until_ready(logits)
    assert logits.shape == (2, num_classes)
    assert bool(jnp.all(jnp.isfinite(logits)))
    print("KERNEL_OK")
</pallas_src>

<mosaic_0001>
module attributes {stable_mosaic.version = 11 : i64} {
  func.func @kernel(%arg0: i32, %arg1: memref<1x16x580xbf16, #tpu.memory_space<vmem>>, %arg2: memref<16x144xbf16, #tpu.memory_space<vmem>>, %arg3: memref<16x1xf32, #tpu.memory_space<vmem>>, %arg4: memref<1x324xf32, #tpu.memory_space<vmem>>, %arg5: memref<16x144xbf16, #tpu.memory_space<vmem>>, %arg6: memref<16x1xf32, #tpu.memory_space<vmem>>, %arg7: memref<16x144xbf16, #tpu.memory_space<vmem>>, %arg8: memref<16x1xf32, #tpu.memory_space<vmem>>, %arg9: memref<1x324xf32, #tpu.memory_space<vmem>>, %arg10: memref<16x144xbf16, #tpu.memory_space<vmem>>, %arg11: memref<16x1xf32, #tpu.memory_space<vmem>>, %arg12: memref<16x144xbf16, #tpu.memory_space<vmem>>, %arg13: memref<16x1xf32, #tpu.memory_space<vmem>>, %arg14: memref<16x16xbf16, #tpu.memory_space<vmem>>, %arg15: memref<16x1xf32, #tpu.memory_space<vmem>>, %arg16: memref<324x100xbf16, #tpu.memory_space<vmem>>, %arg17: memref<1x100xf32, #tpu.memory_space<vmem>>, %arg18: memref<10x16xbf16, #tpu.memory_space<vmem>>, %arg19: memref<10x1xf32, #tpu.memory_space<vmem>>, %arg20: memref<1x10x1xf32, #tpu.memory_space<vmem>>, %arg21: memref<16x580xbf16, #tpu.memory_space<vmem>>, %arg22: memref<16x580xbf16, #tpu.memory_space<vmem>>, %arg23: memref<16x580xbf16, #tpu.memory_space<vmem>>, %arg24: memref<16x356xbf16, #tpu.memory_space<vmem>>) attributes {dimension_semantics = [#tpu.dimension_semantics<parallel>], iteration_bounds = array<i64: 2>, scalar_prefetch = 0 : i64, scratch_operands = 4 : i64, tpu.core_type = #tpu.core_type<tc>, window_params = [{transform_indices = @transform_0, window_bounds = array<i64: 1, 16, 580>}, {pipeline_mode = #tpu.pipeline_mode<synchronous>, transform_indices = @transform_1, window_bounds = array<i64: 16, 144>}, {pipeline_mode = #tpu.pipeline_mode<synchronous>, transform_indices = @transform_2, window_bounds = array<i64: 16, 1>}, {pipeline_mode = #tpu.pipeline_mode<synchronous>, transform_indices = @transform_3, window_bounds = array<i64: 1, 324>}, {pipeline_mode = #tpu.pipeline_mode<synchronous>, transform_indices = @transform_4, window_bounds = array<i64: 16, 144>}, {pipeline_mode = #tpu.pipeline_mode<synchronous>, transform_indices = @transform_5, window_bounds = array<i64: 16, 1>}, {pipeline_mode = #tpu.pipeline_mode<synchronous>, transform_indices = @transform_6, window_bounds = array<i64: 16, 144>}, {pipeline_mode = #tpu.pipeline_mode<synchronous>, transform_indices = @transform_7, window_bounds = array<i64: 16, 1>}, {pipeline_mode = #tpu.pipeline_mode<synchronous>, transform_indices = @transform_8, window_bounds = array<i64: 1, 324>}, {pipeline_mode = #tpu.pipeline_mode<synchronous>, transform_indices = @transform_9, window_bounds = array<i64: 16, 144>}, {pipeline_mode = #tpu.pipeline_mode<synchronous>, transform_indices = @transform_10, window_bounds = array<i64: 16, 1>}, {pipeline_mode = #tpu.pipeline_mode<synchronous>, transform_indices = @transform_11, window_bounds = array<i64: 16, 144>}, {pipeline_mode = #tpu.pipeline_mode<synchronous>, transform_indices = @transform_12, window_bounds = array<i64: 16, 1>}, {pipeline_mode = #tpu.pipeline_mode<synchronous>, transform_indices = @transform_13, window_bounds = array<i64: 16, 16>}, {pipeline_mode = #tpu.pipeline_mode<synchronous>, transform_indices = @transform_14, window_bounds = array<i64: 16, 1>}, {pipeline_mode = #tpu.pipeline_mode<synchronous>, transform_indices = @transform_15, window_bounds = array<i64: 324, 100>}, {pipeline_mode = #tpu.pipeline_mode<synchronous>, transform_indices = @transform_16, window_bounds = array<i64: 1, 100>}, {pipeline_mode = #tpu.pipeline_mode<synchronous>, transform_indices = @transform_17, window_bounds = array<i64: 10, 16>}, {pipeline_mode = #tpu.pipeline_mode<synchronous>, transform_indices = @transform_18, window_bounds = array<i64: 10, 1>}, {transform_indices = @transform_19, window_bounds = array<i64: 1, 10, 1>}]} {
    %c0 = arith.constant 0 : index
    %c0_0 = arith.constant 0 : index
    %c0_1 = arith.constant 0 : index
    %0 = vector.load %arg1[%c0, %c0_0, %c0_1] : memref<1x16x580xbf16, #tpu.memory_space<vmem>>, vector<1x16x580xbf16>
    %1 = vector.shape_cast %0 : vector<1x16x580xbf16> to vector<16x580xbf16>
    %c0_2 = arith.constant 0 : index
    %c0_3 = arith.constant 0 : index
    %2 = vector.load %arg2[%c0_2, %c0_3] : memref<16x144xbf16, #tpu.memory_space<vmem>>, vector<16x144xbf16>
    %3 = vector.extract_strided_slice %1 {offsets = [0, 109], sizes = [16, 324], strides = [1, 1]} : vector<16x580xbf16> to vector<16x324xbf16>
    %4 = vector.extract_strided_slice %1 {offsets = [0, 110], sizes = [16, 324], strides = [1, 1]} : vector<16x580xbf16> to vector<16x324xbf16>
    %5 = vector.extract_strided_slice %1 {offsets = [0, 111], sizes = [16, 324], strides = [1, 1]} : vector<16x580xbf16> to vector<16x324xbf16>
    %6 = vector.extract_strided_slice %1 {offsets = [0, 127], sizes = [16, 324], strides = [1, 1]} : vector<16x580xbf16> to vector<16x324xbf16>
    %7 = vector.extract_strided_slice %1 {offsets = [0, 128], sizes = [16, 324], strides = [1, 1]} : vector<16x580xbf16> to vector<16x324xbf16>
    %8 = vector.extract_strided_slice %1 {offsets = [0, 129], sizes = [16, 324], strides = [1, 1]} : vector<16x580xbf16> to vector<16x324xbf16>
    %9 = vector.extract_strided_slice %1 {offsets = [0, 145], sizes = [16, 324], strides = [1, 1]} : vector<16x580xbf16> to vector<16x324xbf16>
    %10 = vector.extract_strided_slice %1 {offsets = [0, 146], sizes = [16, 324], strides = [1, 1]} : vector<16x580xbf16> to vector<16x324xbf16>
    %11 = vector.extract_strided_slice %1 {offsets = [0, 147], sizes = [16, 324], strides = [1, 1]} : vector<16x580xbf16> to vector<16x324xbf16>
    %12 = tpu.concatenate %3, %4, %5, %6, %7, %8, %9, %10, %11 in 0 : vector<16x324xbf16>, vector<16x324xbf16>, vector<16x324xbf16>, vector<16x324xbf16>, vector<16x324xbf16>, vector<16x324xbf16>, vector<16x324xbf16>, vector<16x324xbf16>, vector<16x324xbf16> -> vector<144x324xbf16>
    %cst = arith.constant dense<0.000000e+00> : vector<16x324xf32>
    %13 = tpu.matmul %2, %12, %cst {dimension_numbers = #tpu.dot_dimension_numbers<[1], [0], [0], [1], [0, 0, 1, 1], [], []>} : vector<16x144xbf16>, vector<144x324xbf16>, vector<16x324xf32> -> vector<16x324xf32>
    %c0_4 = arith.constant 0 : index
    %c0_5 = arith.constant 0 : index
    %14 = vector.load %arg3[%c0_4, %c0_5] : memref<16x1xf32, #tpu.memory_space<vmem>>, vector<16x1xf32>
    %15 = vector.broadcast %14 : vector<16x1xf32> to vector<16x324xf32>
    %16 = arith.addf %13, %15 : vector<16x324xf32>
    %cst_6 = arith.constant 0.000000e+00 : f32
    %17 = vector.broadcast %cst_6 : f32 to vector<16x324xf32>
    %18 = arith.maximumf %16, %17 : vector<16x324xf32>
    %c0_7 = arith.constant 0 : index
    %c0_8 = arith.constant 0 : index
    %19 = vector.load %arg4[%c0_7, %c0_8] : memref<1x324xf32, #tpu.memory_space<vmem>>, vector<1x324xf32>
    %20 = vector.broadcast %19 : vector<1x324xf32> to vector<16x324xf32>
    %21 = arith.mulf %18, %20 : vector<16x324xf32>
    %cst_9 = arith.constant 0.000000e+00 : bf16
    %22 = vector.broadcast %cst_9 : bf16 to vector<16x128xbf16>
    %c0_10 = arith.constant 0 : index
    %c0_11 = arith.constant 0 : index
    %23 = vector.load %arg21[%c0_10, %c0_11] : memref<16x580xbf16, #tpu.memory_space<vmem>>, vector<16x128xbf16>
    tpu.vector_store %arg21[%c0_10, %c0_11], %22 {strides = array<i32>} : memref<16x580xbf16, #tpu.memory_space<vmem>>, vector<16x128xbf16>,
    %c0_12 = arith.constant 0 : index
    %c452 = arith.constant 452 : index
    %24 = vector.load %arg21[%c0_12, %c452] : memref<16x580xbf16, #tpu.memory_space<vmem>>, vector<16x128xbf16>
    tpu.vector_store %arg21[%c0_12, %c452], %22 {strides = array<i32>} : memref<16x580xbf16, #tpu.memory_space<vmem>>, vector<16x128xbf16>,
    %25 = arith.truncf %21 : vector<16x324xf32> to vector<16x324xbf16>
    %c0_13 = arith.constant 0 : index
    %c128 = arith.constant 128 : index
    %26 = vector.load %arg21[%c0_13, %c128] : memref<16x580xbf16, #tpu.memory_space<vmem>>, vector<16x324xbf16>
    tpu.vector_store %arg21[%c0_13, %c128], %25 {strides = array<i32>} : memref<16x580xbf16, #tpu.memory_space<vmem>>, vector<16x324xbf16>,
    %c0_14 = arith.constant 0 : index
    %c0_15 = arith.constant 0 : index
    %27 = vector.load %arg21[%c0_14, %c0_15] : memref<16x580xbf16, #tpu.memory_space<vmem>>, vector<16x580xbf16>
    %c0_16 = arith.constant 0 : index
    %c0_17 = arith.constant 0 : index
    %28 = vector.load %arg5[%c0_16, %c0_17] : memref<16x144xbf16, #tpu.memory_space<vmem>>, vector<16x144xbf16>
    %29 = vector.extract_strided_slice %27 {offsets = [0, 109], sizes = [16, 324], strides = [1, 1]} : vector<16x580xbf16> to vector<16x324xbf16>
    %30 = vector.extract_strided_slice %27 {offsets = [0, 110], sizes = [16, 324], strides = [1, 1]} : vector<16x580xbf16> to vector<16x324xbf16>
    %31 = vector.extract_strided_slice %27 {offsets = [0, 111], sizes = [16, 324], strides = [1, 1]} : vector<16x580xbf16> to vector<16x324xbf16>
    %32 = vector.extract_strided_slice %27 {offsets = [0, 127], sizes = [16, 324], strides = [1, 1]} : vector<16x580xbf16> to vector<16x324xbf16>
    %33 = vector.extract_strided_slice %27 {offsets = [0, 128], sizes = [16, 324], strides = [1, 1]} : vector<16x580xbf16> to vector<16x324xbf16>
    %34 = vector.extract_strided_slice %27 {offsets = [0, 129], sizes = [16, 324], strides = [1, 1]} : vector<16x580xbf16> to vector<16x324xbf16>
    %35 = vector.extract_strided_slice %27 {offsets = [0, 145], sizes = [16, 324], strides = [1, 1]} : vector<16x580xbf16> to vector<16x324xbf16>
    %36 = vector.extract_strided_slice %27 {offsets = [0, 146], sizes = [16, 324], strides = [1, 1]} : vector<16x580xbf16> to vector<16x324xbf16>
    %37 = vector.extract_strided_slice %27 {offsets = [0, 147], sizes = [16, 324], strides = [1, 1]} : vector<16x580xbf16> to vector<16x324xbf16>
    %38 = tpu.concatenate %29, %30, %31, %32, %33, %34, %35, %36, %37 in 0 : vector<16x324xbf16>, vector<16x324xbf16>, vector<16x324xbf16>, vector<16x324xbf16>, vector<16x324xbf16>, vector<16x324xbf16>, vector<16x324xbf16>, vector<16x324xbf16>, vector<16x324xbf16> -> vector<144x324xbf16>
    %cst_18 = arith.constant dense<0.000000e+00> : vector<16x324xf32>
    %39 = tpu.matmul %28, %38, %cst_18 {dimension_numbers = #tpu.dot_dimension_numbers<[1], [0], [0], [1], [0, 0, 1, 1], [], []>} : vector<16x144xbf16>, vector<144x324xbf16>, vector<16x324xf32> -> vector<16x324xf32>
    %c0_19 = arith.constant 0 : index
    %c0_20 = arith.constant 0 : index
    %40 = vector.load %arg6[%c0_19, %c0_20] : memref<16x1xf32, #tpu.memory_space<vmem>>, vector<16x1xf32>
    %41 = vector.broadcast %40 : vector<16x1xf32> to vector<16x324xf32>
    %42 = arith.addf %39, %41 : vector<16x324xf32>
    %cst_21 = arith.constant 0.000000e+00 : f32
    %43 = vector.broadcast %cst_21 : f32 to vector<16x324xf32>
    %44 = arith.maximumf %42, %43 : vector<16x324xf32>
    %c0_22 = arith.constant 0 : index
    %c0_23 = arith.constant 0 : index
    %45 = vector.load %arg9[%c0_22, %c0_23] : memref<1x324xf32, #tpu.memory_space<vmem>>, vector<1x324xf32>
    %46 = vector.broadcast %45 : vector<1x324xf32> to vector<16x324xf32>
    %47 = arith.mulf %44, %46 : vector<16x324xf32>
    %cst_24 = arith.constant 0.000000e+00 : bf16
    %48 = vector.broadcast %cst_24 : bf16 to vector<16x128xbf16>
    %c0_25 = arith.constant 0 : index
    %c0_26 = arith.constant 0 : index
    %49 = vector.load %arg22[%c0_25, %c0_26] : memref<16x580xbf16, #tpu.memory_space<vmem>>, vector<16x128xbf16>
    tpu.vector_store %arg22[%c0_25, %c0_26], %48 {strides = array<i32>} : memref<16x580xbf16, #tpu.memory_space<vmem>>, vector<16x128xbf16>,
    %c0_27 = arith.constant 0 : index
    %c452_28 = arith.constant 452 : index
    %50 = vector.load %arg22[%c0_27, %c452_28] : memref<16x580xbf16, #tpu.memory_space<vmem>>, vector<16x128xbf16>
    tpu.vector_store %arg22[%c0_27, %c452_28], %48 {strides = array<i32>} : memref<16x580xbf16, #tpu.memory_space<vmem>>, vector<16x128xbf16>,
    %51 = arith.truncf %47 : vector<16x324xf32> to vector<16x324xbf16>
    %c0_29 = arith.constant 0 : index
    %c128_30 = arith.constant 128 : index
    %52 = vector.load %arg22[%c0_29, %c128_30] : memref<16x580xbf16, #tpu.memory_space<vmem>>, vector<16x324xbf16>
    tpu.vector_store %arg22[%c0_29, %c128_30], %51 {strides = array<i32>} : memref<16x580xbf16, #tpu.memory_space<vmem>>, vector<16x324xbf16>,
    %c0_31 = arith.constant 0 : index
    %c0_32 = arith.constant 0 : index
    %53 = vector.load %arg22[%c0_31, %c0_32] : memref<16x580xbf16, #tpu.memory_space<vmem>>, vector<16x580xbf16>
    %c0_33 = arith.constant 0 : index
    %c0_34 = arith.constant 0 : index
    %54 = vector.load %arg7[%c0_33, %c0_34] : memref<16x144xbf16, #tpu.memory_space<vmem>>, vector<16x144xbf16>
    %55 = vector.extract_strided_slice %53 {offsets = [0, 109], sizes = [16, 324], strides = [1, 1]} : vector<16x580xbf16> to vector<16x324xbf16>
    %56 = vector.extract_strided_slice %53 {offsets = [0, 110], sizes = [16, 324], strides = [1, 1]} : vector<16x580xbf16> to vector<16x324xbf16>
    %57 = vector.extract_strided_slice %53 {offsets = [0, 111], sizes = [16, 324], strides = [1, 1]} : vector<16x580xbf16> to vector<16x324xbf16>
    %58 = vector.extract_strided_slice %53 {offsets = [0, 127], sizes = [16, 324], strides = [1, 1]} : vector<16x580xbf16> to vector<16x324xbf16>
    %59 = vector.extract_strided_slice %53 {offsets = [0, 128], sizes = [16, 324], strides = [1, 1]} : vector<16x580xbf16> to vector<16x324xbf16>
    %60 = vector.extract_strided_slice %53 {offsets = [0, 129], sizes = [16, 324], strides = [1, 1]} : vector<16x580xbf16> to vector<16x324xbf16>
    %61 = vector.extract_strided_slice %53 {offsets = [0, 145], sizes = [16, 324], strides = [1, 1]} : vector<16x580xbf16> to vector<16x324xbf16>
    %62 = vector.extract_strided_slice %53 {offsets = [0, 146], sizes = [16, 324], strides = [1, 1]} : vector<16x580xbf16> to vector<16x324xbf16>
    %63 = vector.extract_strided_slice %53 {offsets = [0, 147], sizes = [16, 324], strides = [1, 1]} : vector<16x580xbf16> to vector<16x324xbf16>
    %64 = tpu.concatenate %55, %56, %57, %58, %59, %60, %61, %62, %63 in 0 : vector<16x324xbf16>, vector<16x324xbf16>, vector<16x324xbf16>, vector<16x324xbf16>, vector<16x324xbf16>, vector<16x324xbf16>, vector<16x324xbf16>, vector<16x324xbf16>, vector<16x324xbf16> -> vector<144x324xbf16>
    %cst_35 = arith.constant dense<0.000000e+00> : vector<16x324xf32>
    %65 = tpu.matmul %54, %64, %cst_35 {dimension_numbers = #tpu.dot_dimension_numbers<[1], [0], [0], [1], [0, 0, 1, 1], [], []>} : vector<16x144xbf16>, vector<144x324xbf16>, vector<16x324xf32> -> vector<16x324xf32>
    %66 = vector.extract_strided_slice %27 {offsets = [0, 128], sizes = [16, 324], strides = [1, 1]} : vector<16x580xbf16> to vector<16x324xbf16>
    %67 = arith.extf %66 : vector<16x324xbf16> to vector<16x324xf32>
    %c0_36 = arith.constant 0 : index
    %c0_37 = arith.constant 0 : index
    %68 = vector.load %arg8[%c0_36, %c0_37] : memref<16x1xf32, #tpu.memory_space<vmem>>, vector<16x1xf32>
    %69 = vector.broadcast %68 : vector<16x1xf32> to vector<16x324xf32>
    %70 = arith.addf %65, %69 : vector<16x324xf32>
    %71 = arith.addf %70, %67 : vector<16x324xf32>
    %cst_38 = arith.constant 0.000000e+00 : f32
    %72 = vector.broadcast %cst_38 : f32 to vector<16x324xf32>
    %73 = arith.maximumf %71, %72 : vector<16x324xf32>
    %c0_39 = arith.constant 0 : index
    %c0_40 = arith.constant 0 : index
    %74 = vector.load %arg9[%c0_39, %c0_40] : memref<1x324xf32, #tpu.memory_space<vmem>>, vector<1x324xf32>
    %75 = vector.broadcast %74 : vector<1x324xf32> to vector<16x324xf32>
    %76 = arith.mulf %73, %75 : vector<16x324xf32>
    %cst_41 = arith.constant 0.000000e+00 : bf16
    %77 = vector.broadcast %cst_41 : bf16 to vector<16x128xbf16>
    %c0_42 = arith.constant 0 : index
    %c0_43 = arith.constant 0 : index
    %78 = vector.load %arg23[%c0_42, %c0_43] : memref<16x580xbf16, #tpu.memory_space<vmem>>, vector<16x128xbf16>
    tpu.vector_store %arg23[%c0_42, %c0_43], %77 {strides = array<i32>} : memref<16x580xbf16, #tpu.memory_space<vmem>>, vector<16x128xbf16>,
    %c0_44 = arith.constant 0 : index
    %c452_45 = arith.constant 452 : index
    %79 = vector.load %arg23[%c0_44, %c452_45] : memref<16x580xbf16, #tpu.memory_space<vmem>>, vector<16x128xbf16>
    tpu.vector_store %arg23[%c0_44, %c452_45], %77 {strides = array<i32>} : memref<16x580xbf16, #tpu.memory_space<vmem>>, vector<16x128xbf16>,
    %80 = arith.truncf %76 : vector<16x324xf32> to vector<16x324xbf16>
    %c0_46 = arith.constant 0 : index
    %c128_47 = arith.constant 128 : index
    %81 = vector.load %arg23[%c0_46, %c128_47] : memref<16x580xbf16, #tpu.memory_space<vmem>>, vector<16x324xbf16>
    tpu.vector_store %arg23[%c0_46, %c128_47], %80 {strides = array<i32>} : memref<16x580xbf16, #tpu.memory_space<vmem>>, vector<16x324xbf16>,
    %c0_48 = arith.constant 0 : index
    %c0_49 = arith.constant 0 : index
    %82 = vector.load %arg23[%c0_48, %c0_49] : memref<16x580xbf16, #tpu.memory_space<vmem>>, vector<16x580xbf16>
    %c0_50 = arith.constant 0 : index
    %c0_51 = arith.constant 0 : index
    %83 = vector.load %arg10[%c0_50, %c0_51] : memref<16x144xbf16, #tpu.memory_space<vmem>>, vector<16x144xbf16>
    %84 = vector.extract_strided_slice %82 {offsets = [0, 109], sizes = [16, 324], strides = [1, 1]} : vector<16x580xbf16> to vector<16x324xbf16>
    %85 = vector.extract_strided_slice %82 {offsets = [0, 110], sizes = [16, 324], strides = [1, 1]} : vector<16x580xbf16> to vector<16x324xbf16>
    %86 = vector.extract_strided_slice %82 {offsets = [0, 111], sizes = [16, 324], strides = [1, 1]} : vector<16x580xbf16> to vector<16x324xbf16>
    %87 = vector.extract_strided_slice %82 {offsets = [0, 127], sizes = [16, 324], strides = [1, 1]} : vector<16x580xbf16> to vector<16x324xbf16>
    %88 = vector.extract_strided_slice %82 {offsets = [0, 128], sizes = [16, 324], strides = [1, 1]} : vector<16x580xbf16> to vector<16x324xbf16>
    %89 = vector.extract_strided_slice %82 {offsets = [0, 129], sizes = [16, 324], strides = [1, 1]} : vector<16x580xbf16> to vector<16x324xbf16>
    %90 = vector.extract_strided_slice %82 {offsets = [0, 145], sizes = [16, 324], strides = [1, 1]} : vector<16x580xbf16> to vector<16x324xbf16>
    %91 = vector.extract_strided_slice %82 {offsets = [0, 146], sizes = [16, 324], strides = [1, 1]} : vector<16x580xbf16> to vector<16x324xbf16>
    %92 = vector.extract_strided_slice %82 {offsets = [0, 147], sizes = [16, 324], strides = [1, 1]} : vector<16x580xbf16> to vector<16x324xbf16>
    %93 = tpu.concatenate %84, %85, %86, %87, %88, %89, %90, %91, %92 in 0 : vector<16x324xbf16>, vector<16x324xbf16>, vector<16x324xbf16>, vector<16x324xbf16>, vector<16x324xbf16>, vector<16x324xbf16>, vector<16x324xbf16>, vector<16x324xbf16>, vector<16x324xbf16> -> vector<144x324xbf16>
    %cst_52 = arith.constant dense<0.000000e+00> : vector<16x324xf32>
    %94 = tpu.matmul %83, %93, %cst_52 {dimension_numbers = #tpu.dot_dimension_numbers<[1], [0], [0], [1], [0, 0, 1, 1], [], []>} : vector<16x144xbf16>, vector<144x324xbf16>, vector<16x324xf32> -> vector<16x324xf32>
    %95 = arith.truncf %94 : vector<16x324xf32> to vector<16x324xbf16>
    %96 = vector.extract_strided_slice %82 {offsets = [0, 128], sizes = [16, 324], strides = [1, 1]} : vector<16x580xbf16> to vector<16x324xbf16>
    %97 = tpu.concatenate %95, %96 in 0 : vector<16x324xbf16>, vector<16x324xbf16> -> vector<32x324xbf16>
    %c0_53 = arith.constant 0 : index
    %c0_54 = arith.constant 0 : index
    %98 = vector.load %arg16[%c0_53, %c0_54] : memref<324x100xbf16, #tpu.memory_space<vmem>>, vector<324x100xbf16>
    %cst_55 = arith.constant dense<0.000000e+00> : vector<32x100xf32>
    %99 = tpu.matmul %97, %98, %cst_55 {dimension_numbers = #tpu.dot_dimension_numbers<[1], [0], [0], [1], [0, 0, 1, 1], [], []>} : vector<32x324xbf16>, vector<324x100xbf16>, vector<32x100xf32> -> vector<32x100xf32>
    %100 = vector.extract_strided_slice %99 {offsets = [0, 0], sizes = [16, 100], strides = [1, 1]} : vector<32x100xf32> to vector<16x100xf32>
    %c0_56 = arith.constant 0 : index
    %c0_57 = arith.constant 0 : index
    %101 = vector.load %arg11[%c0_56, %c0_57] : memref<16x1xf32, #tpu.memory_space<vmem>>, vector<16x1xf32>
    %102 = vector.broadcast %101 : vector<16x1xf32> to vector<16x100xf32>
    %103 = arith.addf %100, %102 : vector<16x100xf32>
    %cst_58 = arith.constant 0.000000e+00 : f32
    %104 = vector.broadcast %cst_58 : f32 to vector<16x100xf32>
    %105 = arith.maximumf %103, %104 : vector<16x100xf32>
    %c0_59 = arith.constant 0 : index
    %c0_60 = arith.constant 0 : index
    %106 = vector.load %arg17[%c0_59, %c0_60] : memref<1x100xf32, #tpu.memory_space<vmem>>, vector<1x100xf32>
    %107 = vector.broadcast %106 : vector<1x100xf32> to vector<16x100xf32>
    %108 = arith.mulf %105, %107 : vector<16x100xf32>
    %c0_61 = arith.constant 0 : index
    %c0_62 = arith.constant 0 : index
    %109 = vector.load %arg14[%c0_61, %c0_62] : memref<16x16xbf16, #tpu.memory_space<vmem>>, vector<16x16xbf16>
    %110 = vector.extract_strided_slice %99 {offsets = [16, 0], sizes = [16, 100], strides = [1, 1]} : vector<32x100xf32> to vector<16x100xf32>
    %111 = arith.truncf %110 : vector<16x100xf32> to vector<16x100xbf16>
    %cst_63 = arith.constant dense<0.000000e+00> : vector<16x100xf32>
    %112 = tpu.matmul %109, %111, %cst_63 {dimension_numbers = #tpu.dot_dimension_numbers<[1], [0], [0], [1], [0, 0, 1, 1], [], []>} : vector<16x16xbf16>, vector<16x100xbf16>, vector<16x100xf32> -> vector<16x100xf32>
    %c0_64 = arith.constant 0 : index
    %c0_65 = arith.constant 0 : index
    %113 = vector.load %arg15[%c0_64, %c0_65] : memref<16x1xf32, #tpu.memory_space<vmem>>, vector<16x1xf32>
    %114 = vector.broadcast %113 : vector<16x1xf32> to vector<16x100xf32>
    %115 = arith.addf %112, %114 : vector<16x100xf32>
    %cst_66 = arith.constant 0.000000e+00 : bf16
    %116 = vector.broadcast %cst_66 : bf16 to vector<16x128xbf16>
    %c0_67 = arith.constant 0 : index
    %c0_68 = arith.constant 0 : index
    %117 = vector.load %arg24[%c0_67, %c0_68] : memref<16x356xbf16, #tpu.memory_space<vmem>>, vector<16x128xbf16>
    tpu.vector_store %arg24[%c0_67, %c0_68], %116 {strides = array<i32>} : memref<16x356xbf16, #tpu.memory_space<vmem>>, vector<16x128xbf16>,
    %c0_69 = arith.constant 0 : index
    %c228 = arith.constant 228 : index
    %118 = vector.load %arg24[%c0_69, %c228] : memref<16x356xbf16, #tpu.memory_space<vmem>>, vector<16x128xbf16>
    tpu.vector_store %arg24[%c0_69, %c228], %116 {strides = array<i32>} : memref<16x356xbf16, #tpu.memory_space<vmem>>, vector<16x128xbf16>,
    %119 = arith.truncf %108 : vector<16x100xf32> to vector<16x100xbf16>
    %c0_70 = arith.constant 0 : index
    %c128_71 = arith.constant 128 : index
    %120 = vector.load %arg24[%c0_70, %c128_71] : memref<16x356xbf16, #tpu.memory_space<vmem>>, vector<16x100xbf16>
    tpu.vector_store %arg24[%c0_70, %c128_71], %119 {strides = array<i32>} : memref<16x356xbf16, #tpu.memory_space<vmem>>, vector<16x100xbf16>,
    %c0_72 = arith.constant 0 : index
    %c0_73 = arith.constant 0 : index
    %121 = vector.load %arg24[%c0_72, %c0_73] : memref<16x356xbf16, #tpu.memory_space<vmem>>, vector<16x356xbf16>
    %c0_74 = arith.constant 0 : index
    %c0_75 = arith.constant 0 : index
    %122 = vector.load %arg12[%c0_74, %c0_75] : memref<16x144xbf16, #tpu.memory_space<vmem>>, vector<16x144xbf16>
    %123 = vector.extract_strided_slice %121 {offsets = [0, 117], sizes = [16, 100], strides = [1, 1]} : vector<16x356xbf16> to vector<16x100xbf16>
    %124 = vector.extract_strided_slice %121 {offsets = [0, 118], sizes = [16, 100], strides = [1, 1]} : vector<16x356xbf16> to vector<16x100xbf16>
    %125 = vector.extract_strided_slice %121 {offsets = [0, 119], sizes = [16, 100], strides = [1, 1]} : vector<16x356xbf16> to vector<16x100xbf16>
    %126 = vector.extract_strided_slice %121 {offsets = [0, 127], sizes = [16, 100], strides = [1, 1]} : vector<16x356xbf16> to vector<16x100xbf16>
    %127 = vector.extract_strided_slice %121 {offsets = [0, 128], sizes = [16, 100], strides = [1, 1]} : vector<16x356xbf16> to vector<16x100xbf16>
    %128 = vector.extract_strided_slice %121 {offsets = [0, 129], sizes = [16, 100], strides = [1, 1]} : vector<16x356xbf16> to vector<16x100xbf16>
    %129 = vector.extract_strided_slice %121 {offsets = [0, 137], sizes = [16, 100], strides = [1, 1]} : vector<16x356xbf16> to vector<16x100xbf16>
    %130 = vector.extract_strided_slice %121 {offsets = [0, 138], sizes = [16, 100], strides = [1, 1]} : vector<16x356xbf16> to vector<16x100xbf16>
    %131 = vector.extract_strided_slice %121 {offsets = [0, 139], sizes = [16, 100], strides = [1, 1]} : vector<16x356xbf16> to vector<16x100xbf16>
    %132 = tpu.concatenate %123, %124, %125, %126, %127, %128, %129, %130, %131 in 0 : vector<16x100xbf16>, vector<16x100xbf16>, vector<16x100xbf16>, vector<16x100xbf16>, vector<16x100xbf16>, vector<16x100xbf16>, vector<16x100xbf16>, vector<16x100xbf16>, vector<16x100xbf16> -> vector<144x100xbf16>
    %cst_76 = arith.constant dense<0.000000e+00> : vector<16x100xf32>
    %133 = tpu.matmul %122, %132, %cst_76 {dimension_numbers = #tpu.dot_dimension_numbers<[1], [0], [0], [1], [0, 0, 1, 1], [], []>} : vector<16x144xbf16>, vector<144x100xbf16>, vector<16x100xf32> -> vector<16x100xf32>
    %c0_77 = arith.constant 0 : index
    %c0_78 = arith.constant 0 : index
    %134 = vector.load %arg13[%c0_77, %c0_78] : memref<16x1xf32, #tpu.memory_space<vmem>>, vector<16x1xf32>
    %135 = vector.broadcast %134 : vector<16x1xf32> to vector<16x100xf32>
    %136 = arith.addf %133, %135 : vector<16x100xf32>
    %137 = arith.addf %136, %115 : vector<16x100xf32>
    %cst_79 = arith.constant 0.000000e+00 : f32
    %138 = vector.broadcast %cst_79 : f32 to vector<16x100xf32>
    %139 = arith.maximumf %137, %138 : vector<16x100xf32>
    %c0_80 = arith.constant 0 : index
    %c0_81 = arith.constant 0 : index
    %140 = vector.load %arg17[%c0_80, %c0_81] : memref<1x100xf32, #tpu.memory_space<vmem>>, vector<1x100xf32>
    %141 = vector.broadcast %140 : vector<1x100xf32> to vector<16x100xf32>
    %142 = arith.mulf %139, %141 : vector<16x100xf32>
    %cst_82 = arith.constant dense<0.000000e+00> : vector<16xf32>
    %143 = vector.multi_reduction <add>, %142, %cst_82 [1] : vector<16x100xf32> to vector<16xf32>
    %144 = vector.shape_cast %143 : vector<16xf32> to vector<16x1xf32>
    %cst_83 = arith.constant 1.562500e-02 : f32
    %145 = vector.broadcast %cst_83 : f32 to vector<16x1xf32>
    %146 = arith.mulf %144, %145 : vector<16x1xf32>
    %c0_84 = arith.constant 0 : index
    %c0_85 = arith.constant 0 : index
    %147 = vector.load %arg18[%c0_84, %c0_85] : memref<10x16xbf16, #tpu.memory_space<vmem>>, vector<10x16xbf16>
    %148 = arith.truncf %146 : vector<16x1xf32> to vector<16x1xbf16>
    %cst_86 = arith.constant dense<0.000000e+00> : vector<10x1xf32>
    %149 = tpu.matmul %147, %148, %cst_86 {dimension_numbers = #tpu.dot_dimension_numbers<[1], [0], [0], [1], [0, 0, 1, 1], [], []>} : vector<10x16xbf16>, vector<16x1xbf16>, vector<10x1xf32> -> vector<10x1xf32>
    %c0_87 = arith.constant 0 : index
    %c0_88 = arith.constant 0 : index
    %150 = vector.load %arg19[%c0_87, %c0_88] : memref<10x1xf32, #tpu.memory_space<vmem>>, vector<10x1xf32>
    %151 = arith.addf %149, %150 : vector<10x1xf32>
    %c0_89 = arith.constant 0 : index
    %c0_90 = arith.constant 0 : index
    %c0_91 = arith.constant 0 : index
    %152 = vector.load %arg20[%c0_89, %c0_90, %c0_91] : memref<1x10x1xf32, #tpu.memory_space<vmem>>, vector<1x10x1xf32>
    %153 = vector.shape_cast %152 : vector<1x10x1xf32> to vector<10x1xf32>
    %154 = vector.shape_cast %151 : vector<10x1xf32> to vector<1x10x1xf32>
    tpu.vector_store %arg20[%c0_89, %c0_90, %c0_91], %154 {strides = array<i32>} : memref<1x10x1xf32, #tpu.memory_space<vmem>>, vector<1x10x1xf32>,
    return
  }
  func.func @transform_0(%arg0: i32) -> (i32, i32, i32) {
    %c0_i32 = arith.constant 0 : i32
    %c0_i32_0 = arith.constant 0 : i32
    %c0_i32_1 = arith.constant 0 : i32
    return %arg0, %c0_i32, %c0_i32_0 : i32, i32, i32
  }
  func.func @transform_1(%arg0: i32) -> (i32, i32) {
    %c0_i32 = arith.constant 0 : i32
    %c0_i32_0 = arith.constant 0 : i32
    %c0_i32_1 = arith.constant 0 : i32
    return %c0_i32, %c0_i32_0 : i32, i32
  }
  func.func @transform_2(%arg0: i32) -> (i32, i32) {
    %c0_i32 = arith.constant 0 : i32
    %c0_i32_0 = arith.constant 0 : i32
    %c0_i32_1 = arith.constant 0 : i32
    return %c0_i32, %c0_i32_0 : i32, i32
  }
  func.func @transform_3(%arg0: i32) -> (i32, i32) {
    %c0_i32 = arith.constant 0 : i32
    %c0_i32_0 = arith.constant 0 : i32
    %c0_i32_1 = arith.constant 0 : i32
    return %c0_i32, %c0_i32_0 : i32, i32
  }
  func.func @transform_4(%arg0: i32) -> (i32, i32) {
    %c0_i32 = arith.constant 0 : i32
    %c0_i32_0 = arith.constant 0 : i32
    %c0_i32_1 = arith.constant 0 : i32
    return %c0_i32, %c0_i32_0 : i32, i32
  }
  func.func @transform_5(%arg0: i32) -> (i32, i32) {
    %c0_i32 = arith.constant 0 : i32
    %c0_i32_0 = arith.constant 0 : i32
    %c0_i32_1 = arith.constant 0 : i32
    return %c0_i32, %c0_i32_0 : i32, i32
  }
  func.func @transform_6(%arg0: i32) -> (i32, i32) {
    %c0_i32 = arith.constant 0 : i32
    %c0_i32_0 = arith.constant 0 : i32
    %c0_i32_1 = arith.constant 0 : i32
    return %c0_i32, %c0_i32_0 : i32, i32
  }
  func.func @transform_7(%arg0: i32) -> (i32, i32) {
    %c0_i32 = arith.constant 0 : i32
    %c0_i32_0 = arith.constant 0 : i32
    %c0_i32_1 = arith.constant 0 : i32
    return %c0_i32, %c0_i32_0 : i32, i32
  }
  func.func @transform_8(%arg0: i32) -> (i32, i32) {
    %c0_i32 = arith.constant 0 : i32
    %c0_i32_0 = arith.constant 0 : i32
    %c0_i32_1 = arith.constant 0 : i32
    return %c0_i32, %c0_i32_0 : i32, i32
  }
  func.func @transform_9(%arg0: i32) -> (i32, i32) {
    %c0_i32 = arith.constant 0 : i32
    %c0_i32_0 = arith.constant 0 : i32
    %c0_i32_1 = arith.constant 0 : i32
    return %c0_i32, %c0_i32_0 : i32, i32
  }
  func.func @transform_10(%arg0: i32) -> (i32, i32) {
    %c0_i32 = arith.constant 0 : i32
    %c0_i32_0 = arith.constant 0 : i32
    %c0_i32_1 = arith.constant 0 : i32
    return %c0_i32, %c0_i32_0 : i32, i32
  }
  func.func @transform_11(%arg0: i32) -> (i32, i32) {
    %c0_i32 = arith.constant 0 : i32
    %c0_i32_0 = arith.constant 0 : i32
    %c0_i32_1 = arith.constant 0 : i32
    return %c0_i32, %c0_i32_0 : i32, i32
  }
  func.func @transform_12(%arg0: i32) -> (i32, i32) {
    %c0_i32 = arith.constant 0 : i32
    %c0_i32_0 = arith.constant 0 : i32
    %c0_i32_1 = arith.constant 0 : i32
    return %c0_i32, %c0_i32_0 : i32, i32
  }
  func.func @transform_13(%arg0: i32) -> (i32, i32) {
    %c0_i32 = arith.constant 0 : i32
    %c0_i32_0 = arith.constant 0 : i32
    %c0_i32_1 = arith.constant 0 : i32
    return %c0_i32, %c0_i32_0 : i32, i32
  }
  func.func @transform_14(%arg0: i32) -> (i32, i32) {
    %c0_i32 = arith.constant 0 : i32
    %c0_i32_0 = arith.constant 0 : i32
    %c0_i32_1 = arith.constant 0 : i32
    return %c0_i32, %c0_i32_0 : i32, i32
  }
  func.func @transform_15(%arg0: i32) -> (i32, i32) {
    %c0_i32 = arith.constant 0 : i32
    %c0_i32_0 = arith.constant 0 : i32
    %c0_i32_1 = arith.constant 0 : i32
    return %c0_i32, %c0_i32_0 : i32, i32
  }
  func.func @transform_16(%arg0: i32) -> (i32, i32) {
    %c0_i32 = arith.constant 0 : i32
    %c0_i32_0 = arith.constant 0 : i32
    %c0_i32_1 = arith.constant 0 : i32
    return %c0_i32, %c0_i32_0 : i32, i32
  }
  func.func @transform_17(%arg0: i32) -> (i32, i32) {
    %c0_i32 = arith.constant 0 : i32
    %c0_i32_0 = arith.constant 0 : i32
    %c0_i32_1 = arith.constant 0 : i32
    return %c0_i32, %c0_i32_0 : i32, i32
  }
  func.func @transform_18(%arg0: i32) -> (i32, i32) {
    %c0_i32 = arith.constant 0 : i32
    %c0_i32_0 = arith.constant 0 : i32
    %c0_i32_1 = arith.constant 0 : i32
    return %c0_i32, %c0_i32_0 : i32, i32
  }
  func.func @transform_19(%arg0: i32) -> (i32, i32, i32) {
    %c0_i32 = arith.constant 0 : i32
    %c0_i32_0 = arith.constant 0 : i32
    %c0_i32_1 = arith.constant 0 : i32
    return %arg0, %c0_i32, %c0_i32_0 : i32, i32, i32
  }
}

</mosaic_0001>

<bundles_post_ra>
// kernel: resnet_forward.1
= control target key start
LH: loop header
LB: loop body
LE: loop exit
PB: predicated region body
PF: predicated region fallthrough
CT: control target
= control target key end

     0   :  { %s3956_s0 = inlined_call_operand.vmem [shape: bf16[2,16,580], index: 0, kind: input, shape index: {}]   ;;  %s3957_s1 = inlined_call_operand.vmem [shape: bf16[16,144], index: 1, kind: input, shape index: {}]   ;;  %s3958_s2 = inlined_call_operand.vmem [shape: f32[16,1], index: 2, kind: input, shape index: {}]   ;;  %s3959_s3 = inlined_call_operand.vmem [shape: f32[1,324], index: 3, kind: input, shape index: {}, may-alias: {3,8}]   ;;  %s3960_s4 = inlined_call_operand.vmem [shape: bf16[16,144], index: 4, kind: input, shape index: {}]   ;;  %s3961_s5 = inlined_call_operand.vmem [shape: f32[16,1], index: 5, kind: input, shape index: {}]   ;;  %s3962_s6 = inlined_call_operand.vmem [shape: bf16[16,144], index: 6, kind: input, shape index: {}]   ;;  %s3963_s7 = inlined_call_operand.vmem [shape: f32[16,1], index: 7, kind: input, shape index: {}]   ;;  %s3964_s8 = inlined_call_operand.vmem [shape: f32[1,324], index: 8, kind: input, shape index: {}, may-alias: {3,8}]   ;;  %s3965_s9 = inlined_call_operand.vmem [shape: bf16[16,144], index: 9, kind: input, shape index: {}]   ;;  %s3966_s10 = inlined_call_operand.vmem [shape: f32[16,1], index: 10, kind: input, shape index: {}]   ;;  %s3967_s11 = inlined_call_operand.vmem [shape: bf16[16,144], index: 11, kind: input, shape index: {}]   ;;  %s3968_s12 = inlined_call_operand.vmem [shape: f32[16,1], index: 12, kind: input, shape index: {}]   ;;  %s3969_s13 = inlined_call_operand.vmem [shape: bf16[16,16], index: 13, kind: input, shape index: {}]   ;;  %s3970_s14 = inlined_call_operand.vmem [shape: f32[16,1], index: 14, kind: input, shape index: {}]   ;;  %s3971_s15 = inlined_call_operand.vmem [shape: bf16[324,100], index: 15, kind: input, shape index: {}]   ;;  %s3972_s16 = inlined_call_operand.vmem [shape: f32[1,100], index: 16, kind: input, shape index: {}]   ;;  %s3973_s17 = inlined_call_operand.vmem [shape: bf16[10,16], index: 17, kind: input, shape index: {}]   ;;  %s3974_s18 = inlined_call_operand.vmem [shape: f32[10,1], index: 18, kind: input, shape index: {}]   ;;  %s3975_s19 = inlined_call_operand.vmem [shape: f32[2,10,1], index: 19, kind: output, shape index: {}]  }
   0x1   :  { %3997 = sst [smem:[#allocation6_spill]] %s3956_s0  ;;  %s3032_s0 = smov 0  }
   0x2   :  { %3998 = sst [smem:[#allocation7_spill]] %s3957_s1 }
   0x3   :  { %3999 = sst [smem:[#allocation8_spill]] %s3958_s2 }
   0x4   :  { %4000 = sst [smem:[#allocation9_spill]] %s3959_s3 }
   0x5   :  { %4001 = sst [smem:[#allocation10_spill]] %s3960_s4 }
   0x6 LB: > { %s2600_s30 = sadd.s32 4294967295, %s2914_s0   ;;  %p2604_p0 = scmp.ge.s32.totalorder %s2914_s0, 1  ;;  %s2914_s0 = sphi %s3032_s0, %s29_s0  }
   0x7   : > { %p537_p1 = scmp.lt.s32.totalorder %s2914_s0, 3 }
   0x9   : > { %p538_p2 = pnand %p2604_p0, %p537_p1 }
   0xa   : > { %p593_p3 = scmp.lt.s32.totalorder (!%p538_p2), %s2600_s30, 1  ;;  %s4002_s22 = sld [smem:[#allocation6_spill]] (!%p538_p2) }
   0xb   : > { %541 = sbr.rel (%p538_p2) target bundleno = 2837 (0xb15), region = 96  ;;  %s3982_s23 = smov (!%p538_p2), 91  }
   0xc   : > { %s3984_s24 = smov (!%p538_p2), 92   ;;  %s3986_s25 = smov (!%p538_p2), 108  }
   0xd   : > { %s3980_s3 = smov (!%p538_p2), 109   ;;  %s3978_s26 = smov (!%p538_p2), 90  }
   0xe   : > { %s3994_s27 = smov (!%p538_p2), 110   ;;  %s3992_s28 = smov (!%p538_p2), 126  }
   0xf   : > { %s3990_s29 = smov (!%p538_p2), 127   ;;  %s4004_s1 = sld [smem:[#allocation8_spill]] (!%p538_p2) }
  0x10   : > { %s4017_s30 = smov (!%p593_p3, %s2600_s30), 1  ;;  %vm695_vm0 = vcmask 744448   ;;  %vm677_vm1 = vcmask 883712   ;;  %vm668_vm2 = vcmask 891904   ;;  %vm686_vm3 = vcmask 752640   ;;  %s4005_s21 = sld [smem:[#allocation9_spill]] }
  0x11   : > { %s2878_s20 = smul.u32 40, %s4017_s30  ;;  %vm658_vm4 = vcmask 900096   ;;  %vm646_vm5 = vcmask 1031168   ;;  %vm704_vm6 = vcmask 736256   ;;  %vm634_vm7 = vcmask 1039360   ;;  %s4008_s4 = sld [smem:[#allocation10_spill]] }
  0x12   : > { %vm800_vm8 = vcmask 154624   ;;  %vm855_vm9 = vcmask 130048   ;;  %vm965_vm10 = vcmask 1044000   ;;  %vm966_vm11 = vcmask 556036  }
  0x13   : > { %s3046_s2 = scalar_lea.vmem %s4002_s22, %s2878_s20  ;;  %s3988_s20 = smov 19   ;;  %vm967_vm12 = vmor %vm966_vm11, %vm965_vm10  ;;  %vm975_vm13 = vcmask 551936   ;;  %vm1439_vm14 = vcmask 1043456   ;;  %vm2233_vm15 = vcmask 1041408   ;;  %vm2543_vm10 = vcmask 1024  }
  0x14   : > { %v2829_v0 = vld [vmem:[%s3046_s2 + $0xc] sm:$0xf]  ;;  %v2620_v1 = vld [vmem:[%s3046_s2 + $0x1c] sm:$0xf0]  ;;  %v2828_v2 = vld [vmem:[%s3046_s2 + $0x4] sm:$0xf] }
  0x15   : > { %v3051_v3 = vor.u32 %v2829_v0, %v2620_v1  ;;  %v2612_v4 = vld [vmem:[%s3046_s2 + $0x14] sm:$0xf0]  ;;  %v2618_v5 = vld [vmem:[%s3046_s2 + $0x8] sm:$0xf]  ;;  %v2831_v6 = vld [vmem:[%s3046_s2 + $0x18] sm:$0xf0] }
  0x16   : > { %v3056_v7 = vor.u32 %v2828_v2, %v2612_v4  ;;  %v3058_v8 = vor.u32 %v2831_v6, %v2618_v5  ;;  %v2610_v9 = vld [vmem:[%s3046_s2] sm:$0xf]  ;;  %v2830_v10 = vld [vmem:[%s3046_s2 + $0x10] sm:$0xf0]  ;;  %s4003_s22 = sld [smem:[#allocation7_spill]]  ;;  %s4006_s2 = smov 109  }
  0x17   : > { %693 = vrot.lane.b32.xlu1 %v3051_v3, %s3982_s23  ;;  %v3104_v11 = vor.u32 %v2830_v10, %v2610_v9 }
  0x18   : > { %689 = vrot.lane.b32.xlu0 %v3056_v7, %s3982_s23  ;;  %682 = vrot.lane.b32.xlu2 %v3058_v8, %s3984_s24 }
  0x1f   : > { %680 = vrot.lane.b32.xlu1 %v3056_v7, %s3984_s24 }
  0x20   : > { %691 = vrot.lane.b32.xlu0 %v3058_v8, %s3982_s23  ;;  %684 = vrot.lane.b32.xlu2 %v3051_v3, %s3984_s24 }
  0x27   : > { %673 = vrot.lane.b32.xlu1 %v3058_v8, %s3986_s25 }
  0x28   : > { %671 = vrot.lane.b32.xlu0 %v3056_v7, %s3986_s25  ;;  %675 = vrot.lane.b32.xlu2 %v3051_v3, %s3986_s25 }
  0x2f   : > { %664 = vrot.lane.b32.xlu1 %v3058_v8, %s3980_s3 }
  0x30   : > { %662 = vrot.lane.b32.xlu0 %v3056_v7, %s3980_s3  ;;  %666 = vrot.lane.b32.xlu2 %v3051_v3, %s3980_s3  ;;  %s4007_s3 = smov 90  }
  0x37   : > { %700 = vrot.lane.b32.xlu1 %v3058_v8, %s3978_s26 }
  0x38   : > { %698 = vrot.lane.b32.xlu0 %v3056_v7, %s3978_s26  ;;  %702 = vrot.lane.b32.xlu2 %v3051_v3, %s3978_s26  ;;  %s4009_s26 = smov 19  }
  0x3f   : > { %654 = vrot.lane.b32.xlu1 %v3058_v8, %s3994_s27 }
  0x40   : > { %652 = vrot.lane.b32.xlu0 %v3056_v7, %s3994_s27  ;;  %656 = vrot.lane.b32.xlu2 %v3051_v3, %s3994_s27 }
  0x47   : > { %642 = vrot.lane.b32.xlu1 %v3058_v8, %s3992_s28 }
  0x48   : > { %640 = vrot.lane.b32.xlu0 %v3056_v7, %s3992_s28  ;;  %644 = vrot.lane.b32.xlu2 %v3051_v3, %s3992_s28 }
  0x4f   : > { %628 = vrot.lane.b32.xlu1 %v3056_v7, %s3990_s29 }
  0x50   : > { %650 = vrot.lane.b32.xlu0 %v3104_v11, %s3994_s27  ;;  %630 = vrot.lane.b32.xlu2 %v3058_v8, %s3990_s29 }
  0x57   : > { %638 = vrot.lane.b32.xlu1 %v3104_v11, %s3992_s28 }
  0x58   : > { %632 = vrot.lane.b32.xlu0 %v3051_v3, %s3990_s29  ;;  %626 = vrot.lane.b32.xlu2 %v3104_v11, %s3990_s29 }
  0x72   : > { %v683_v12 = vpop.permute.xlu2 %682 }
  0x7a   : > { %v685_v13 = vpop.permute.xlu2 %684 }
  0x7b   : > { %782 = vrot.lane.b32.xlu0 %v685_v13, %s3988_s20  ;;  %v688_v32 = vsel %vm686_vm3, %v683_v12, %v685_v13 }
  0x82   : > { %v676_v16 = vpop.permute.xlu2 %675 }
  0x89   : > { %v694_v14 = vpop.permute.xlu1 %693 }
  0x8a   : > { %v690_v15 = vpop.permute.xlu0 %689  ;;  %790 = vrot.lane.b32.xlu2 %v694_v14, %s3988_s20  ;;  %v667_v19 = vpop.permute.xlu2 %666 }
  0x8b   : > { %784 = vrot.lane.b32.xlu1 %v690_v15, %s3988_s20 }
  0x91   : > { %v681_v17 = vpop.permute.xlu1 %680 }
  0x92   : > { %v692_v18 = vpop.permute.xlu0 %691  ;;  %776 = vrot.lane.b32.xlu2 %v681_v17, %s3988_s20  ;;  %v3128_v25 = vpop.permute.xlu2 %702  ;;  %v687_v34 = vsel %vm686_vm3, %v681_v17, %v683_v12 }
  0x93   : > { %774 = vrot.lane.b32.xlu1 %v676_v16, %s3988_s20  ;;  %v697_v24 = vsel %vm695_vm0, %v692_v18, %v694_v14  ;;  %v696_v29 = vsel %vm695_vm0, %v690_v15, %v692_v18 }
  0x99   : > { %v674_v20 = vpop.permute.xlu1 %673 }
  0x9a   : > { %v672_v21 = vpop.permute.xlu0 %671  ;;  %v679_v28 = vsel %vm677_vm1, %v674_v20, %v676_v16  ;;  %v657_v30 = vpop.permute.xlu2 %656 }
  0x9b   : > { %766 = vrot.lane.b32.xlu1 %v667_v19, %s3988_s20  ;;  %768 = vrot.lane.b32.xlu0 %v672_v21, %s3988_s20  ;;  %v678_v37 = vsel %vm677_vm1, %v672_v21, %v674_v20  ;;  %v2628_v20 = vld [vmem:[%s4003_s22 + $0x8] sm:$0xf0] }
  0xa1   : > { %v665_v22 = vpop.permute.xlu1 %664 }
  0xa2   : > { %v663_v23 = vpop.permute.xlu0 %662  ;;  %v670_v38 = vsel %vm668_vm2, %v665_v22, %v667_v19  ;;  %v645_v39 = vpop.permute.xlu2 %644  ;;  %v2832_v19 = vld [vmem:[%s4003_s22 + $0x4] sm:$0xf] }
  0xa3   : > { %788 = vrot.lane.b32.xlu1 %v697_v24, %s3988_s20  ;;  %760 = vrot.lane.b32.xlu0 %v663_v23, %s3988_s20  ;;  %v669_v31 = vsel %vm668_vm2, %v663_v23, %v665_v22  ;;  %v3194_v21 = vor.u32 %v2832_v19, %v2628_v20 }
  0xa9   : > { %v701_v26 = vpop.permute.xlu1 %700 }
  0xaa   : > { %v699_v27 = vpop.permute.xlu0 %698  ;;  %v706_v42 = vsel %vm704_vm6, %v701_v26, %v3128_v25  ;;  %v631_v45 = vpop.permute.xlu2 %630 }
  0xab   : > { %772 = vrot.lane.b32.xlu1 %v679_v28, %s3988_s20  ;;  %786 = vrot.lane.b32.xlu0 %v696_v29, %s3988_s20  ;;  %v705_v43 = vsel %vm704_vm6, %v699_v27, %v701_v26 }
  0xac   : > { %792 = vrot.lane.b32.xlu2 %v699_v27, %s3988_s20 }
  0xb1   : > { %v655_v33 = vpop.permute.xlu1 %654 }
  0xb2   : > { %v653_v35 = vpop.permute.xlu0 %652  ;;  %v661_v49 = vsel %vm658_vm4, %v655_v33, %v657_v30  ;;  %v627_v54 = vpop.permute.xlu2 %626 }
  0xb3   : > { %762 = vrot.lane.b32.xlu1 %v669_v31, %s3988_s20  ;;  %780 = vrot.lane.b32.xlu0 %v688_v32, %s3988_s20  ;;  %v660_v36 = vsel %vm658_vm4, %v653_v35, %v655_v33 }
  0xb4   : > { %778 = vrot.lane.b32.xlu2 %v687_v34, %s3988_s20 }
  0xb9   : > { %v643_v40 = vpop.permute.xlu1 %642 }
  0xba   : > { %v649_v41 = vsel %vm646_vm5, %v643_v40, %v645_v39  ;;  %v641_v44 = vpop.permute.xlu0 %640 }
  0xbb   : > { %770 = vrot.lane.b32.xlu0 %v678_v37, %s3988_s20  ;;  %754 = vrot.lane.b32.xlu1 %v660_v36, %s3988_s20  ;;  %v648_v48 = vsel %vm646_vm5, %v641_v44, %v643_v40 }
  0xbc   : > { %764 = vrot.lane.b32.xlu2 %v670_v38, %s3988_s20 }
  0xc1   : > { %v629_v46 = vpop.permute.xlu1 %628 }
  0xc2   : > { %v636_v47 = vsel %vm634_vm7, %v629_v46, %v631_v45  ;;  %v651_v50 = vpop.permute.xlu0 %650  ;;  %v635_v56 = vsel %vm634_vm7, %v627_v54, %v629_v46 }
  0xc3   : > { %796 = vrot.lane.b32.xlu0 %v706_v42, %s3988_s20  ;;  %748 = vrot.lane.b32.xlu1 %v649_v41, %s3988_s20  ;;  %v659_v51 = vsel %vm658_vm4, %v651_v50, %v653_v35  ;;  %v707_v42 = vld [vmem:[%s4004_s1] sm:$0xff] }
  0xc4   : > { %794 = vrot.lane.b32.xlu2 %v705_v43, %s3988_s20  ;;  %v708_v43 = vld [vmem:[%s4004_s1 + $0x8] sm:$0xff]  ;;  %s4014_s1 = smov 126  }
  0xc9   : > { %v639_v53 = vpop.permute.xlu1 %638 }
  0xca   : > { %v633_v52 = vpop.permute.xlu0 %632  ;;  %v647_v57 = vsel %vm646_vm5, %v639_v53, %v641_v44  ;;  %v2925_v44 = vmov 0  }
  0xcb   : > { %738 = vrot.lane.b32.xlu1 %v636_v47, %s3988_s20  ;;  %746 = vrot.lane.b32.xlu0 %v648_v48, %s3988_s20  ;;  %v637_v55 = vsel %vm634_vm7, %v631_v45, %v633_v52  ;;  %963 = vst [vmem:[#allocation2] sm:$0xf] %v2925_v44 }
  0xcc   : > { %756 = vrot.lane.b32.xlu2 %v661_v49, %s3988_s20  ;;  %2903 = vset.pattern.permute.xlu0 %v2925_v44  ;;  %964 = vst [vmem:[#allocation2 + $0x14] sm:$0xf] %v2925_v44 }
  0xcd   : > { %2904 = vset.pattern.permute.xlu1 %v2925_v44  ;;  %1328 = vst [vmem:[#allocation3] sm:$0xf] %v2925_v44  ;;  %2905 = vset.pattern.permute.xlu2 %v2925_v44 }
  0xce   : > { %1329 = vst [vmem:[#allocation3 + $0x14] sm:$0xf] %v2925_v44 }
  0xcf   : > { %1712 = vst [vmem:[#allocation4] sm:$0xf] %v2925_v44 }
  0xd0   : > { %1713 = vst [vmem:[#allocation4 + $0x14] sm:$0xf] %v2925_v44 }
  0xd1   : > { %2353 = vst [vmem:[#allocation5] sm:$0xf] %v2925_v44 }
  0xd2   : > { %2354 = vst [vmem:[#allocation5 + $0xc] sm:$0xf] %v2925_v44 }
  0xd3   : > { %750 = vrot.lane.b32.xlu1 %v645_v39, %s3988_s20  ;;  %758 = vrot.lane.b32.xlu0 %v657_v30, %s3988_s20  ;;  %968 = vst.msk [vmem:[#allocation2 + $0xc] sm:$0xff] %vm967_vm12, %v2925_v44 }
  0xd4   : > { %752 = vrot.lane.b32.xlu2 %v659_v51, %s3988_s20  ;;  %969 = vst.msk [vmem:[#allocation2 + $0x20] sm:$0xff] %vm967_vm12, %v2925_v44 }
  0xd5   : > { %1330 = vst.msk [vmem:[#allocation3 + $0xc] sm:$0xff] %vm967_vm12, %v2925_v44 }
  0xd6   : > { %1331 = vst.msk [vmem:[#allocation3 + $0x20] sm:$0xff] %vm967_vm12, %v2925_v44 }
  0xd7   : > { %1714 = vst.msk [vmem:[#allocation4 + $0xc] sm:$0xff] %vm967_vm12, %v2925_v44 }
  0xd8   : > { %1715 = vst.msk [vmem:[#allocation4 + $0x20] sm:$0xff] %vm967_vm12, %v2925_v44 }
  0xdb   : > { %736 = vrot.lane.b32.xlu1 %v635_v56, %s3988_s20  ;;  %744 = vrot.lane.b32.xlu0 %v647_v57, %s3988_s20  ;;  %v2626_v56 = vld [vmem:[%s4003_s22] sm:$0xf]  ;;  %v2833_v57 = vld [vmem:[%s4003_s22 + $0x4] sm:$0xf0] }
  0xdc   : > { %740 = vrot.lane.b32.xlu2 %v637_v55, %s3988_s20 }
  0xe3   : > { %728 = vrot.lane.b32.xlu1 %v3104_v11, %s3988_s20  ;;  %732 = vrot.lane.b32.xlu0 %v3058_v8, %s3988_s20 }
  0xe4   : > { %730 = vrot.lane.b32.xlu2 %v3056_v7, %s3988_s20  ;;  %v791_v58 = vpop.permute.xlu2 %790 }
  0xeb   : > { %798 = vrot.lane.b32.xlu0 %v3128_v25, %s3988_s20  ;;  %716 = vperm.xlu1 %2904, %v708_v43  }
  0xec   : > { %742 = vrot.lane.b32.xlu2 %v633_v52, %s3988_s20  ;;  %v777_v59 = vpop.permute.xlu2 %776 }
  0xed   : > { %v783_v61 = vpop.permute.xlu0 %782 }
  0xf3   : > { %711 = vperm.xlu0 %2903, %v707_v42  }
  0xf4   : > { %734 = vrot.lane.b32.xlu2 %v3051_v3, %s3988_s20 }
  0xfd   : > { %v785_v60 = vpop.permute.xlu1 %784 }
 0x105   : > { %v775_v62 = vpop.permute.xlu1 %774 }
 0x106   : > { %v793_v63 = vpop.permute.xlu2 %792 }
 0x10d   : > { %v767_v0 = vpop.permute.xlu1 %766  ;;  %v769_v1 = vpop.permute.xlu0 %768 }
 0x10e   : > { %v779_v2 = vpop.permute.xlu2 %778 }
 0x10f   : > { %v819_v13 = vsel %vm800_vm8, %v777_v59, %v779_v2 }
 0x115   : > { %v789_v4 = vpop.permute.xlu1 %788  ;;  %v761_v5 = vpop.permute.xlu0 %760 }
 0x116   : > { %v765_v6 = vpop.permute.xlu2 %764  ;;  %v824_v12 = vsel %vm800_vm8, %v789_v4, %v791_v58 }
 0x117   : > { %v815_v28 = vsel %vm800_vm8, %v765_v6, %v767_v0 }
 0x11d   : > { %v773_v7 = vpop.permute.xlu1 %772  ;;  %v787_v8 = vpop.permute.xlu0 %786 }
 0x11e   : > { %v795_v9 = vpop.permute.xlu2 %794  ;;  %v822_v10 = vsel %vm800_vm8, %v785_v60, %v787_v8  ;;  %v823_v11 = vsel %vm800_vm8, %v787_v8, %v789_v4  ;;  %v818_v22 = vsel %vm800_vm8, %v773_v7, %v775_v62  ;;  %v2637_v4 = vld [vmem:[#allocation2] sm:$0xf] }
 0x11f   : > { %859 = vmatpush.bf16.msra.mxu0 %v822_v10  ;;  %v825_v3 = vsel %vm800_vm8, %v793_v63, %v795_v9  ;;  %887 = vmatpush.bf16.msra.mxu2 %v823_v11  ;;  %v2627_v63 = vor.u32 %v2833_v57, %v2626_v56 }
 0x120   : > { %880 = vmatpush.bf16.msra.mxu1 %v825_v3 }
 0x123   : > { %860 = vmatpush.bf16.msra.mxu0 %v819_v13  ;;  %2632 = vmatmul.msk.bf16.vlgmr.msra.gmra.mxu1 %vm855_vm9, %v3194_v21 }
 0x124   : > { %915 = vmatpush.bf16.msrb.mxu1 %v824_v12  ;;  %v949_v12 = vld [vmem:[%s4005_s21] sm:$0x7]  ;;  %s4010_s21 = smov 108  }
 0x125   : > { %v763_v14 = vpop.permute.xlu1 %762  ;;  %v781_v15 = vpop.permute.xlu0 %780 }
 0x126   : > { %v757_v16 = vpop.permute.xlu2 %756  ;;  %v820_v17 = vsel %vm800_vm8, %v779_v2, %v781_v15  ;;  %v821_v18 = vsel %vm800_vm8, %v781_v15, %v783_v61  ;;  %v813_v29 = vsel %vm800_vm8, %v761_v5, %v763_v14  ;;  %v814_v30 = vsel %vm800_vm8, %v763_v14, %v765_v6  ;;  %v2836_v5 = vld [vmem:[#allocation2 + $0x10] sm:$0xf0] }
 0x127   : > { %888 = vmatpush.bf16.msra.mxu2 %v820_v17  ;;  %v2638_v6 = vor.u32 %v2836_v5, %v2637_v4 }
 0x128   : > { %916 = vmatpush.bf16.msrb.mxu1 %v821_v18  ;;  %v951_v18 = vperm.slane %v949_v12, 0 }
 0x129   : > { %1001 = vrot.lane.b32.xlu2 %v2638_v6, %s3990_s29  ;;  %1012 = vrot.lane.b32.xlu1 %v2638_v6, %s3992_s28 }
 0x12a   : > { %1023 = vrot.lane.b32.xlu0 %v2638_v6, %s3994_s27 }
 0x12c   : > { %917 = vmatpush.bf16.msrb.mxu1 %v818_v22  ;;  %v952_v22 = vperm.slane %v949_v12, 1 }
 0x12d   : > { %v755_v23 = vpop.permute.xlu1 %754  ;;  %v771_v24 = vpop.permute.xlu0 %770 }
 0x12e   : > { %v753_v25 = vpop.permute.xlu2 %752  ;;  %v816_v26 = vsel %vm800_vm8, %v769_v1, %v771_v24  ;;  %v817_v27 = vsel %vm800_vm8, %v771_v24, %v773_v7  ;;  %v811_v34 = vsel %vm800_vm8, %v755_v23, %v757_v16 }
 0x12f   : > { %861 = vmatpush.bf16.msra.mxu0 %v816_v26  ;;  %889 = vmatpush.bf16.msra.mxu2 %v817_v27  ;;  %v810_v33 = vsel %vm800_vm8, %v753_v25, %v755_v23 }
 0x130   : > { %918 = vmatpush.bf16.msrb.mxu1 %v815_v28 }
 0x131   : > { %1095 = vrot.lane.b32.xlu2 %v2638_v6, %s3988_s20 }
 0x133   : > { %862 = vmatpush.bf16.msra.mxu0 %v813_v29  ;;  %890 = vmatpush.bf16.msra.mxu2 %v814_v30 }
 0x135   : > { %v749_v31 = vpop.permute.xlu1 %748  ;;  %v3204_v32 = vpop.permute.xlu0 %796 }
 0x136   : > { %v826_v35 = vsel %vm800_vm8, %v795_v9, %v3204_v32  ;;  %v741_v36 = vpop.permute.xlu2 %740 }
 0x137   : > { %863 = vmatpush.bf16.msra.mxu0 %v810_v33  ;;  %891 = vmatpush.bf16.msra.mxu2 %v811_v34  ;;  %v953_v34 = vperm.slane %v949_v12, 2 }
 0x138   : > { %908 = vmatpush.bf16.msra.mxu3 %v826_v35 }
 0x13b   : > { %2633 = vmatmul.msk.bf16.vlgmr.msra.gmra.mxu3 %vm855_vm9, %v3194_v21 }
 0x13d   : > { %v739_v37 = vpop.permute.xlu1 %738  ;;  %v747_v38 = vpop.permute.xlu0 %746 }
 0x13e   : > { %v808_v39 = vsel %vm800_vm8, %v747_v38, %v749_v31  ;;  %v731_v40 = vpop.permute.xlu2 %730  ;;  %v805_v41 = vsel %vm800_vm8, %v739_v37, %v741_v36 }
 0x13f   : > { %892 = vmatpush.bf16.msra.mxu2 %v808_v39 }
 0x143   : > { %893 = vmatpush.bf16.msra.mxu2 %v805_v41 }
 0x145   : > { %v751_v45 = vpop.permute.xlu1 %750  ;;  %v759_v46 = vpop.permute.xlu0 %758 }
 0x146   : > { %v812_v47 = vsel %vm800_vm8, %v757_v16, %v759_v46  ;;  %v809_v48 = vsel %vm800_vm8, %v749_v31, %v751_v45  ;;  %v743_v49 = vpop.permute.xlu2 %742 }
 0x147   : > { %919 = vmatpush.bf16.msrb.mxu1 %v812_v47  ;;  %v806_v53 = vsel %vm800_vm8, %v741_v36, %v743_v49 }
 0x14b   : > { %920 = vmatpush.bf16.msrb.mxu1 %v809_v48 }
 0x14d   : > { %v737_v50 = vpop.permute.xlu1 %736  ;;  %v745_v51 = vpop.permute.xlu0 %744 }
 0x14e   : > { %v807_v52 = vsel %vm800_vm8, %v745_v51, %v747_v38  ;;  %v804_v54 = vsel %vm800_vm8, %v737_v50, %v739_v37  ;;  %v735_v55 = vpop.permute.xlu2 %734 }
 0x14f   : > { %864 = vmatpush.bf16.msra.mxu0 %v807_v52  ;;  %921 = vmatpush.bf16.msrb.mxu1 %v806_v53 }
 0x153   : > { %865 = vmatpush.bf16.msra.mxu0 %v804_v54 }
 0x155   : > { %v729_v58 = vpop.permute.xlu1 %728  ;;  %v733_v59 = vpop.permute.xlu0 %732 }
 0x156   : > { %v801_v60 = vsel %vm800_vm8, %v729_v58, %v731_v40  ;;  %v802_v61 = vsel %vm800_vm8, %v731_v40, %v733_v59  ;;  %v803_v62 = vsel %vm800_vm8, %v733_v59, %v735_v55 }
 0x157   : > { %866 = vmatpush.bf16.msra.mxu0 %v801_v60  ;;  %894 = vmatpush.bf16.msra.mxu2 %v802_v61 }
 0x158   : > { %922 = vmatpush.bf16.msrb.mxu1 %v803_v62 }
 0x15a   : > { %867 = vmatmul.bf16.vlgmr.msra.gmra.mxu0 %v2627_v63  ;;  %895 = vmatmul.bf16.vlgmr.msra.gmra.mxu2 %v2627_v63 }
 0x15b   : > { %923 = vmatmul.bf16.vlgmr.msrb.gmra.mxu1 %v2627_v63 }
 0x15d   : > { %v799_v0 = vpop.permute.xlu0 %798  ;;  %v717_v13 = vpop.permute.xlu1 %716 }
 0x15e   : > { %v827_v1 = vsel %vm800_vm8, %v3204_v32, %v799_v0 }
 0x15f   : > { %936 = vmatpush.bf16.msrb.mxu3 %v827_v1 }
 0x162   : > { %2634 = vmatmul.msk.bf16.vlgmr.msrb.gmra.mxu3 %vm855_vm9, %v3194_v21 }
 0x165   : > { %v712_v9 = vpop.permute.xlu0 %711 }
 0x183   : > { %v3300_v61 = vpop.permute.xlu2 %1001 }
 0x18b   : > { %v3302_v62 = vpop.permute.xlu2 %1095 }
 0x19b   : > { %v1013_v1 = vpop.permute.xlu1 %1012 }
 0x19c   : > { %v1024_v4 = vpop.permute.xlu0 %1023 }
 0x1a0   : > { %v882_v2 = vpop.f32.mrf.mxu1 }
 0x1a8   : > { %v884_v8 = vpop.f32.mrf.mxu1 }
 0x1be   : > { %v910_v7 = vpop.f32.mrf.mxu3 }
 0x1c6   : > { %v912_v14 = vpop.f32.mrf.mxu3 }
 0x1d7   : > { %v868_v10 = vpop.f32.mrf.mxu0 }
 0x1d8   : > { %v869_v11 = vadd.f32 %v868_v10, %v712_v9  ;;  %v924_v17 = vpop.f32.mrf.mxu1 }
 0x1d9   : > { %v925_v24 = vadd.f32 %v924_v17, %v712_v9 }
 0x1da   : > { %v883_v3 = vadd.f32 %v882_v2, %v869_v11 }
 0x1dc   : > { %v943_v20 = vmax.f32 %v883_v3, 0.0 }
 0x1dd   : > { %v896_v15 = vpop.f32.mrf.mxu2 }
 0x1de   : > { %v897_v16 = vadd.f32 %v896_v15, %v712_v9  ;;  %v957_v26 = vmul.f32 %v951_v18, %v943_v20 }
 0x1df   : > { %v870_v19 = vpop.f32.mrf.mxu0 }
 0x1e0   : > { %v911_v21 = vadd.f32 %v910_v7, %v897_v16  ;;  %v871_v23 = vadd.f32 %v870_v19, %v717_v13  ;;  %v926_v38 = vpop.f32.mrf.mxu1 }
 0x1e1   : > { %v927_v42 = vadd.f32 %v926_v38, %v717_v13 }
 0x1e2   : > { %v944_v25 = vmax.f32 %v911_v21, 0.0  ;;  %v885_v28 = vadd.f32 %v884_v8, %v871_v23 }
 0x1e4   : > { %v958_v27 = vmul.f32 %v952_v22, %v944_v25  ;;  %v946_v35 = vmax.f32 %v885_v28, 0.0 }
 0x1e5   : > { %v898_v29 = vpop.f32.mrf.mxu2  ;;  %v938_v30 = vpop.f32.mrf.mxu3 }
 0x1e6   : > { %v970_v31 = vpack.c.bf16 %v958_v27, %v957_v26  ;;  %v899_v32 = vadd.f32 %v898_v29, %v717_v13  ;;  %v939_v33 = vadd.f32 %v938_v30, %v925_v24  ;;  %v960_v41 = vmul.f32 %v951_v18, %v946_v35 }
 0x1e8   : > { %974 = vst [vmem:[#allocation2 + $0x4] sm:$0xff] %v970_v31  ;;  %v913_v36 = vadd.f32 %v912_v14, %v899_v32  ;;  %v945_v37 = vmax.f32 %v939_v33, 0.0 }
 0x1ea   : > { %v947_v39 = vmax.f32 %v913_v36, 0.0  ;;  %v959_v40 = vmul.f32 %v953_v34, %v945_v37 }
 0x1ec   : > { %v961_v43 = vmul.f32 %v952_v22, %v947_v39  ;;  %v971_v45 = vpack.c.bf16 %v959_v40, %v959_v40 }
 0x1ed   : > { %v940_v46 = vpop.f32.mrf.mxu3 }
 0x1ee   : > { %v972_v47 = vpack.c.bf16 %v961_v43, %v960_v41  ;;  %976 = vst.msk [vmem:[#allocation2 + $0xc] sm:$0xf] %vm975_vm13, %v971_v45  ;;  %v941_v48 = vadd.f32 %v940_v46, %v927_v42  ;;  %v1074_v45 = vld [vmem:[%s3961_s5] sm:$0xff]  ;;  %v1075_v46 = vld [vmem:[%s3961_s5 + $0x8] sm:$0xff] }
 0x1ef   : > { %v2834_v57 = vld [vmem:[#allocation2 + $0x4] sm:$0xf]  ;;  %v2645_v58 = vld [vmem:[#allocation2 + $0x8] sm:$0xf] }
 0x1f0   : > { %977 = vst [vmem:[#allocation2 + $0x18] sm:$0xff] %v972_v47  ;;  %v948_v49 = vmax.f32 %v941_v48, 0.0 }
 0x1f2   : > { %v962_v50 = vmul.f32 %v953_v34, %v948_v49 }
 0x1f4   : > { %v973_v51 = vpack.c.bf16 %v962_v50, %v962_v50 }
 0x1f5   : > { %v2835_v52 = vld [vmem:[#allocation2 + $0xc] sm:$0xf] }
 0x1f6   : > { %978 = vst.msk [vmem:[#allocation2 + $0x20] sm:$0xf] %vm975_vm13, %v973_v51 }
 0x1f7   : > { %v2639_v55 = vld [vmem:[#allocation2 + $0x14] sm:$0xf0]  ;;  %v2837_v56 = vld [vmem:[#allocation2 + $0x18] sm:$0xf0] }
 0x1f8   : > { %v2646_v59 = vor.u32 %v2837_v56, %v2645_v58  ;;  %v2642_v60 = vor.u32 %v2834_v57, %v2639_v55 }
 0x1fd   : > { %v2647_v53 = vld [vmem:[#allocation2 + $0x1c] sm:$0xf0] }
 0x1fe   : > { %v3264_v54 = vor.u32 %v2835_v52, %v2647_v53 }
 0x200   : > { %1018 = vrot.lane.b32.xlu1 %v3264_v54, %s3992_s28  ;;  %1029 = vrot.lane.b32.xlu0 %v3264_v54, %s3994_s27 }
 0x201   : > { %1062 = vrot.lane.b32.xlu2 %v3264_v54, %s3982_s23 }
 0x208   : > { %1060 = vrot.lane.b32.xlu1 %v2646_v59, %s3982_s23  ;;  %1050 = vrot.lane.b32.xlu0 %v2642_v60, %s3984_s24 }
 0x209   : > { %1054 = vrot.lane.b32.xlu2 %v3264_v54, %s3984_s24 }
 0x210   : > { %1052 = vrot.lane.b32.xlu1 %v2646_v59, %s3984_s24  ;;  %1042 = vrot.lane.b32.xlu0 %v2642_v60, %s3986_s25  ;;  %s4012_s24 = smov 91  }
 0x211   : > { %1046 = vrot.lane.b32.xlu2 %v3264_v54, %s3986_s25 }
 0x218   : > { %1044 = vrot.lane.b32.xlu1 %v2646_v59, %s3986_s25  ;;  %1034 = vrot.lane.b32.xlu0 %v2642_v60, %s4006_s2  ;;  %s4015_s25 = smov 127  }
 0x219   : > { %1038 = vrot.lane.b32.xlu2 %v3264_v54, %s4006_s2 }
 0x220   : > { %1036 = vrot.lane.b32.xlu1 %v2646_v59, %s4006_s2  ;;  %1016 = vrot.lane.b32.xlu0 %v2646_v59, %s3992_s28 }
 0x221   : > { %1007 = vrot.lane.b32.xlu2 %v3264_v54, %s3990_s29 }
 0x228   : > { %1025 = vrot.lane.b32.xlu1 %v2642_v60, %s3994_s27  ;;  %1003 = vrot.lane.b32.xlu0 %v2642_v60, %s3990_s29 }
 0x229   : > { %1070 = vrot.lane.b32.xlu2 %v3264_v54, %s4007_s3 }
 0x230   : > { %1005 = vrot.lane.b32.xlu1 %v2646_v59, %s3990_s29  ;;  %1066 = vrot.lane.b32.xlu0 %v2642_v60, %s4007_s3 }
 0x231   : > { %1058 = vrot.lane.b32.xlu2 %v2642_v60, %s3982_s23  ;;  %s4011_s23 = smov 92  }
 0x238   : > { %1068 = vrot.lane.b32.xlu1 %v2646_v59, %s4007_s3  ;;  %1097 = vrot.lane.b32.xlu0 %v2642_v60, %s3988_s20 }
 0x239   : > { %1027 = vrot.lane.b32.xlu2 %v2646_v59, %s3994_s27 }
 0x240   : > { %1099 = vrot.lane.b32.xlu1 %v2646_v59, %s3988_s20 }
 0x241   : > { %1014 = vrot.lane.b32.xlu2 %v2642_v60, %s3992_s28 }
 0x25b   : > { %v1063_v63 = vpop.permute.xlu2 %1062 }
 0x25c   : > { %1157 = vrot.lane.b32.xlu0 %v1063_v63, %s3988_s20 }
 0x263   : > { %v1055_v0 = vpop.permute.xlu2 %1054 }
 0x264   : > { %1149 = vrot.lane.b32.xlu1 %v1055_v0, %s3988_s20 }
 0x26b   : > { %v1047_v2 = vpop.permute.xlu2 %1046 }
 0x26c   : > { %1141 = vrot.lane.b32.xlu2 %v1047_v2, %s3988_s20 }
 0x272   : > { %v1019_v5 = vpop.permute.xlu1 %1018  ;;  %v3307_v7 = vpop.permute.xlu0 %1029 }
 0x273   : > { %v1039_v6 = vpop.permute.xlu2 %1038 }
 0x27a   : > { %v1061_v8 = vpop.permute.xlu1 %1060  ;;  %v1051_v11 = vpop.permute.xlu0 %1050 }
 0x27b   : > { %v3309_v9 = vpop.permute.xlu2 %1007  ;;  %v1065_v10 = vsel %vm695_vm0, %v1061_v8, %v1063_v63 }
 0x27c   : > { %1155 = vrot.lane.b32.xlu2 %v1065_v10, %s3988_s20 }
 0x282   : > { %v1053_v3 = vpop.permute.xlu1 %1052  ;;  %v1043_v14 = vpop.permute.xlu0 %1042 }
 0x283   : > { %v1071_v12 = vpop.permute.xlu2 %1070  ;;  %v1057_v13 = vsel %vm686_vm3, %v1053_v3, %v1055_v0  ;;  %v1056_v22 = vsel %vm686_vm3, %v1051_v11, %v1053_v3 }
 0x284   : > { %1147 = vrot.lane.b32.xlu2 %v1057_v13, %s3988_s20 }
 0x28a   : > { %v1045_v15 = vpop.permute.xlu1 %1044  ;;  %v1035_v21 = vpop.permute.xlu0 %1034 }
 0x28b   : > { %v1059_v16 = vpop.permute.xlu2 %1058  ;;  %v1049_v17 = vsel %vm677_vm1, %v1045_v15, %v1047_v2  ;;  %v1048_v26 = vsel %vm677_vm1, %v1043_v14, %v1045_v15 }
 0x28c   : > { %1151 = vrot.lane.b32.xlu0 %v1059_v16, %s3988_s20  ;;  %1139 = vrot.lane.b32.xlu2 %v1049_v17, %s3988_s20  ;;  %v1064_v18 = vsel %vm695_vm0, %v1059_v16, %v1061_v8 }
 0x28d   : > { %1153 = vrot.lane.b32.xlu1 %v1064_v18, %s3988_s20 }
 0x292   : > { %v1037_v19 = vpop.permute.xlu1 %1036  ;;  %v1017_v27 = vpop.permute.xlu0 %1016 }
 0x293   : > { %v1041_v20 = vsel %vm668_vm2, %v1037_v19, %v1039_v6  ;;  %v1028_v23 = vpop.permute.xlu2 %1027  ;;  %v1022_v28 = vsel %vm646_vm5, %v1017_v27, %v1019_v5  ;;  %v1040_v29 = vsel %vm668_vm2, %v1035_v21, %v1037_v19 }
 0x294   : > { %1143 = vrot.lane.b32.xlu0 %v1051_v11, %s3988_s20  ;;  %1131 = vrot.lane.b32.xlu2 %v1041_v20, %s3988_s20  ;;  %v1033_v24 = vsel %vm658_vm4, %v1028_v23, %v3307_v7 }
 0x295   : > { %1145 = vrot.lane.b32.xlu1 %v1056_v22, %s3988_s20 }
 0x29a   : > { %v1026_v25 = vpop.permute.xlu1 %1025  ;;  %v1004_v31 = vpop.permute.xlu0 %1003 }
 0x29b   : > { %v1031_v32 = vsel %vm658_vm4, %v1024_v4, %v1026_v25  ;;  %v1032_v34 = vsel %vm658_vm4, %v1026_v25, %v1028_v23  ;;  %v1015_v35 = vpop.permute.xlu2 %1014  ;;  %v1009_v42 = vsel %vm634_vm7, %v3300_v61, %v1004_v31  ;;  %v2653_v25 = vld [vmem:[%s4008_s4] sm:$0xf] }
 0x29c   : > { %1135 = vrot.lane.b32.xlu0 %v1043_v14, %s3988_s20  ;;  %1123 = vrot.lane.b32.xlu2 %v1033_v24, %s3988_s20  ;;  %v1020_v38 = vsel %vm646_vm5, %v1013_v1, %v1015_v35  ;;  %v1021_v40 = vsel %vm646_vm5, %v1015_v35, %v1017_v27 }
 0x29d   : > { %1137 = vrot.lane.b32.xlu1 %v1048_v26, %s3988_s20  ;;  %v2839_v26 = vld [vmem:[%s4008_s4 + $0x4] sm:$0xf0] }
 0x2a2   : > { %v1006_v30 = vpop.permute.xlu1 %1005  ;;  %v1067_v37 = vpop.permute.xlu0 %1066 }
 0x2a3   : > { %v1010_v33 = vsel %vm634_vm7, %v1004_v31, %v1006_v30  ;;  %v1011_v41 = vsel %vm634_vm7, %v1006_v30, %v3309_v9  ;;  %v2838_v31 = vld [vmem:[%s4008_s4 + $0x4] sm:$0xf] }
 0x2a4   : > { %1127 = vrot.lane.b32.xlu0 %v1035_v21, %s3988_s20  ;;  %1115 = vrot.lane.b32.xlu2 %v1022_v28, %s3988_s20  ;;  %v2654_v28 = vor.u32 %v2839_v26, %v2653_v25 }
 0x2a5   : > { %1129 = vrot.lane.b32.xlu1 %v1040_v29, %s3988_s20 }
 0x2aa   : > { %v1069_v36 = vpop.permute.xlu1 %1068  ;;  %v1098_v49 = vpop.permute.xlu0 %1097 }
 0x2ab   : > { %v1072_v39 = vsel %vm704_vm6, %v1067_v37, %v1069_v36  ;;  %v1073_v43 = vsel %vm704_vm6, %v1069_v36, %v1071_v12  ;;  %v1167_v30 = vsel %vm800_vm8, %v3302_v62, %v1098_v49 }
 0x2ac   : > { %1119 = vrot.lane.b32.xlu0 %v1031_v32, %s3988_s20  ;;  %1105 = vrot.lane.b32.xlu2 %v1010_v33, %s3988_s20  ;;  %v2655_v32 = vld [vmem:[%s4008_s4 + $0x8] sm:$0xf0]  ;;  %s2930_s4 = smov 106  }
 0x2ad   : > { %1121 = vrot.lane.b32.xlu1 %v1032_v34, %s3988_s20  ;;  %v2658_v36 = vor.u32 %v2838_v31, %v2655_v32 }
 0x2b2   : > { %v3378_v51 = vpop.permute.xlu1 %1099 }
 0x2b3   : > { %v1168_v27 = vsel %vm800_vm8, %v1098_v49, %v3378_v51 }
 0x2b4   : > { %1111 = vrot.lane.b32.xlu0 %v1020_v38, %s3988_s20  ;;  %1161 = vrot.lane.b32.xlu2 %v1072_v39, %s3988_s20 }
 0x2b5   : > { %1113 = vrot.lane.b32.xlu1 %v1021_v40, %s3988_s20 }
 0x2bc   : > { %1107 = vrot.lane.b32.xlu0 %v1011_v41, %s3988_s20  ;;  %1117 = vrot.lane.b32.xlu2 %v1019_v5, %s3988_s20 }
 0x2bd   : > { %1103 = vrot.lane.b32.xlu1 %v1009_v42, %s3988_s20 }
 0x2c4   : > { %1133 = vrot.lane.b32.xlu0 %v1039_v6, %s3988_s20  ;;  %1165 = vrot.lane.b32.xlu2 %v1071_v12, %s3988_s20 }
 0x2c5   : > { %1159 = vrot.lane.b32.xlu1 %v1067_v37, %s3988_s20 }
 0x2c6   : > { %v3372_v47 = vpop.permute.xlu2 %1141 }
 0x2cc   : > { %1163 = vrot.lane.b32.xlu0 %v1073_v43, %s3988_s20 }
 0x2cd   : > { %1125 = vrot.lane.b32.xlu1 %v3307_v7, %s3988_s20 }
 0x2ce   : > { %v3380_v52 = vpop.permute.xlu0 %1157 }
 0x2d4   : > { %1109 = vrot.lane.b32.xlu0 %v3309_v9, %s3988_s20 }
 0x2d5   : > { %1101 = vrot.lane.b32.xlu1 %v3264_v54, %s3988_s20  ;;  %s2926_s20 = smov 116  }
 0x2d6   : > { %v3374_v48 = vpop.permute.xlu2 %1155  ;;  %v3382_v53 = vpop.permute.xlu1 %1149 }
 0x2d7   : > { %v1190_v62 = vsel %vm800_vm8, %v3374_v48, %v3380_v52 }
 0x2dc   : > { %1078 = vperm.xlu0 %2903, %v1074_v45  }
 0x2dd   : > { %1083 = vperm.xlu1 %2904, %v1075_v46  }
 0x2de   : > { %v3376_v50 = vpop.permute.xlu2 %1147 }
 0x2df   : > { %v1187_v37 = vsel %vm800_vm8, %v3376_v50, %v3382_v53 }
 0x2e6   : > { %v3384_v54 = vpop.permute.xlu2 %1139 }
 0x2e7   : > { %v1184_v42 = vsel %vm800_vm8, %v3384_v54, %v3372_v47 }
 0x2ee   : > { %v3389_v59 = vpop.permute.xlu2 %1131 }
 0x2f6   : > { %v3394_v1 = vpop.permute.xlu2 %1123 }
 0x2fe   : > { %v1152_v55 = vpop.permute.xlu0 %1151  ;;  %v3399_v7 = vpop.permute.xlu2 %1115 }
 0x2ff   : > { %v1154_v56 = vpop.permute.xlu1 %1153 }
 0x300   : > { %v1188_v57 = vsel %vm800_vm8, %v1152_v55, %v1154_v56  ;;  %v1189_v58 = vsel %vm800_vm8, %v1154_v56, %v3374_v48 }
 0x301   : > { %1224 = vmatpush.bf16.msra.mxu3 %v1188_v57  ;;  %1252 = vmatpush.bf16.msrb.mxu2 %v1189_v58  ;;  %v1314_v58 = vld [vmem:[%s3964_s8] sm:$0x7] }
 0x306   : > { %v1144_v60 = vpop.permute.xlu0 %1143  ;;  %v1106_v13 = vpop.permute.xlu2 %1105 }
 0x307   : > { %v1146_v61 = vpop.permute.xlu1 %1145 }
 0x308   : > { %v1185_v63 = vsel %vm800_vm8, %v1144_v60, %v1146_v61  ;;  %v1186_v0 = vsel %vm800_vm8, %v1146_v61, %v3376_v50  ;;  %v1316_v61 = vperm.slane %v1314_v58, 0 }
 0x309   : > { %1225 = vmatpush.bf16.msra.mxu3 %v1185_v63  ;;  %1253 = vmatpush.bf16.msrb.mxu2 %v1186_v0  ;;  %v2664_v0 = vld [vmem:[#allocation3] sm:$0xf] }
 0x30e   : > { %v1136_v2 = vpop.permute.xlu0 %1135  ;;  %v1162_v20 = vpop.permute.xlu2 %1161 }
 0x30f   : > { %v1138_v4 = vpop.permute.xlu1 %1137 }
 0x310   : > { %v1182_v5 = vsel %vm800_vm8, %v1136_v2, %v1138_v4  ;;  %v1183_v6 = vsel %vm800_vm8, %v1138_v4, %v3384_v54 }
 0x311   : > { %1226 = vmatpush.bf16.msra.mxu3 %v1182_v5  ;;  %1254 = vmatpush.bf16.msrb.mxu2 %v1183_v6 }
 0x316   : > { %v1128_v8 = vpop.permute.xlu0 %1127  ;;  %v1118_v29 = vpop.permute.xlu2 %1117 }
 0x317   : > { %v1130_v9 = vpop.permute.xlu1 %1129  ;;  %v1175_v48 = vsel %vm800_vm8, %v3399_v7, %v1118_v29 }
 0x318   : > { %v1179_v10 = vsel %vm800_vm8, %v1128_v8, %v1130_v9  ;;  %v1180_v11 = vsel %vm800_vm8, %v1130_v9, %v3389_v59 }
 0x319   : > { %1227 = vmatpush.bf16.msra.mxu3 %v1179_v10  ;;  %1255 = vmatpush.bf16.msrb.mxu2 %v1180_v11 }
 0x31e   : > { %v1120_v3 = vpop.permute.xlu0 %1119  ;;  %v1166_v38 = vpop.permute.xlu2 %1165 }
 0x31f   : > { %v1122_v12 = vpop.permute.xlu1 %1121 }
 0x320   : > { %v1176_v14 = vsel %vm800_vm8, %v1120_v3, %v1122_v12  ;;  %v1177_v15 = vsel %vm800_vm8, %v1122_v12, %v3394_v1 }
 0x321   : > { %1228 = vmatpush.bf16.msra.mxu3 %v1176_v14  ;;  %1256 = vmatpush.bf16.msrb.mxu2 %v1177_v15 }
 0x326   : > { %v1112_v16 = vpop.permute.xlu0 %1111 }
 0x327   : > { %v1114_v17 = vpop.permute.xlu1 %1113 }
 0x328   : > { %v1173_v18 = vsel %vm800_vm8, %v1112_v16, %v1114_v17  ;;  %v1174_v19 = vsel %vm800_vm8, %v1114_v17, %v3399_v7 }
 0x329   : > { %1229 = vmatpush.bf16.msra.mxu3 %v1173_v18  ;;  %1257 = vmatpush.bf16.msrb.mxu2 %v1174_v19 }
 0x32e   : > { %v1108_v21 = vpop.permute.xlu0 %1107 }
 0x32f   : > { %v1104_v22 = vpop.permute.xlu1 %1103  ;;  %v1171_v23 = vsel %vm800_vm8, %v1106_v13, %v1108_v21 }
 0x330   : > { %1258 = vmatpush.bf16.msrb.mxu2 %v1171_v23  ;;  %v1170_v24 = vsel %vm800_vm8, %v1104_v22, %v1106_v13 }
 0x331   : > { %1230 = vmatpush.bf16.msra.mxu3 %v1170_v24 }
 0x334   : > { %1259 = vmatpush.bf16.msrb.mxu2 %v1168_v27  ;;  %v1318_v27 = vperm.slane %v1314_v58, 2 }
 0x335   : > { %1231 = vmatpush.bf16.msra.mxu3 %v1167_v30 }
 0x336   : > { %v1134_v33 = vpop.permute.xlu0 %1133 }
 0x337   : > { %v1160_v34 = vpop.permute.xlu1 %1159  ;;  %1260 = vmatmul.bf16.vlgmr.msrb.gmra.mxu2 %v2654_v28  ;;  %v1181_v43 = vsel %vm800_vm8, %v3389_v59, %v1134_v33 }
 0x338   : > { %1232 = vmatmul.bf16.vlgmr.msra.gmra.mxu3 %v2654_v28  ;;  %v1191_v35 = vsel %vm800_vm8, %v1160_v34, %v1162_v20 }
 0x339   : > { %1245 = vmatpush.bf16.msrb.mxu0 %v1191_v35 }
 0x33c   : > { %2659 = vmatmul.msk.bf16.vlgmr.msrb.gmra.mxu0 %vm855_vm9, %v2658_v36 }
 0x33d   : > { %1280 = vmatpush.bf16.msra.mxu0 %v1190_v62 }
 0x33e   : > { %v1164_v39 = vpop.permute.xlu0 %1163 }
 0x33f   : > { %v1192_v40 = vsel %vm800_vm8, %v1162_v20, %v1164_v39  ;;  %v1193_v41 = vsel %vm800_vm8, %v1164_v39, %v1166_v38  ;;  %v1126_v45 = vpop.permute.xlu1 %1125 }
 0x340   : > { %1273 = vmatpush.bf16.msra.mxu1 %v1192_v40  ;;  %v1178_v46 = vsel %vm800_vm8, %v3394_v1, %v1126_v45  ;;  %v2842_v1 = vld [vmem:[#allocation3 + $0x10] sm:$0xf0] }
 0x341   : > { %1281 = vmatpush.bf16.msra.mxu0 %v1187_v37  ;;  %v2665_v5 = vor.u32 %v2842_v1, %v2664_v0 }
 0x343   : > { %2660 = vmatmul.msk.bf16.vlgmr.msra.gmra.mxu1 %vm855_vm9, %v2658_v36  ;;  %1384 = vrot.lane.b32.xlu2 %v2665_v5, %s3994_s27 }
 0x344   : > { %1301 = vmatpush.bf16.msrb.mxu1 %v1193_v41  ;;  %1373 = vrot.lane.b32.xlu0 %v2665_v5, %s3992_s28 }
 0x345   : > { %1282 = vmatpush.bf16.msra.mxu0 %v1184_v42  ;;  %1362 = vrot.lane.b32.xlu1 %v2665_v5, %s3990_s29 }
 0x346   : > { %v1110_v49 = vpop.permute.xlu0 %1109 }
 0x347   : > { %v1172_v50 = vsel %vm800_vm8, %v1108_v21, %v1110_v49  ;;  %v1102_v47 = vpop.permute.xlu1 %1101 }
 0x348   : > { %v1169_v52 = vsel %vm800_vm8, %v3378_v51, %v1102_v47  ;;  %v1317_v51 = vperm.slane %v1314_v58, 1 }
 0x349   : > { %1283 = vmatpush.bf16.msra.mxu0 %v1181_v43 }
 0x34b   : > { %1473 = vrot.lane.b32.xlu2 %v2665_v5, %s4009_s26 }
 0x34d   : > { %1284 = vmatpush.bf16.msra.mxu0 %v1178_v46 }
 0x34e   : > { %v1079_v55 = vpop.permute.xlu0 %1078 }
 0x34f   : > { %v1084_v6 = vpop.permute.xlu1 %1083 }
 0x351   : > { %1285 = vmatpush.bf16.msra.mxu0 %v1175_v48 }
 0x353   : > { %2661 = vmatmul.msk.bf16.vlgmr.msrb.gmra.mxu1 %vm855_vm9, %v2658_v36 }
 0x355   : > { %1286 = vmatpush.bf16.msra.mxu0 %v1172_v50 }
 0x359   : > { %1287 = vmatpush.bf16.msra.mxu0 %v1169_v52 }
 0x35c   : > { %1288 = vmatmul.bf16.vlgmr.msra.gmra.mxu0 %v2654_v28 }
 0x39d   : > { %v1385_v48 = vpop.permute.xlu2 %1384 }
 0x3a5   : > { %v3506_v49 = vpop.permute.xlu2 %1473 }
 0x3b6   : > { %v1374_v52 = vpop.permute.xlu0 %1373 }
 0x3b9   : > { %v1247_v53 = vpop.f32.mrf.mxu0 }
 0x3ba   : > { %v1261_v54 = vpop.f32.mrf.mxu2 }
 0x3bb   : > { %v1233_v56 = vpop.f32.mrf.mxu3  ;;  %v1262_v60 = vadd.f32 %v1261_v54, %v1079_v55 }
 0x3bc   : > { %v1234_v57 = vadd.f32 %v1233_v56, %v1079_v55 }
 0x3be   : > { %v1248_v59 = vadd.f32 %v1247_v53, %v1234_v57  ;;  %v1363_v53 = vpop.permute.xlu1 %1362 }
 0x3c0   : > { %v1275_v63 = vpop.f32.mrf.mxu1  ;;  %v1308_v2 = vmax.f32 %v1248_v59, 0.0 }
 0x3c1   : > { %v1276_v4 = vadd.f32 %v1275_v63, %v1262_v60  ;;  %v1249_v9 = vpop.f32.mrf.mxu0 }
 0x3c2   : > { %v1263_v10 = vpop.f32.mrf.mxu2  ;;  %v1322_v3 = vmul.f32 %v1316_v61, %v1308_v2 }
 0x3c3   : > { %v1309_v7 = vmax.f32 %v1276_v4, 0.0  ;;  %v1235_v8 = vpop.f32.mrf.mxu3  ;;  %v1264_v15 = vadd.f32 %v1263_v10, %v1084_v6 }
 0x3c4   : > { %v1236_v11 = vadd.f32 %v1235_v8, %v1084_v6 }
 0x3c5   : > { %v1323_v12 = vmul.f32 %v1317_v51, %v1309_v7 }
 0x3c6   : > { %v1250_v13 = vadd.f32 %v1249_v9, %v1236_v11 }
 0x3c7   : > { %v1332_v14 = vpack.c.bf16 %v1323_v12, %v1322_v3 }
 0x3c8   : > { %v1277_v16 = vpop.f32.mrf.mxu1  ;;  %v1311_v17 = vmax.f32 %v1250_v13, 0.0 }
 0x3c9   : > { %1336 = vst [vmem:[#allocation3 + $0x4] sm:$0xff] %v1332_v14  ;;  %v1278_v18 = vadd.f32 %v1277_v16, %v1264_v15 }
 0x3ca   : > { %v1325_v20 = vmul.f32 %v1316_v61, %v1311_v17 }
 0x3cb   : > { %v1312_v19 = vmax.f32 %v1278_v18, 0.0 }
 0x3cd   : > { %v1326_v21 = vmul.f32 %v1317_v51, %v1312_v19 }
 0x3cf   : > { %v1334_v22 = vpack.c.bf16 %v1326_v21, %v1325_v20 }
 0x3d0   : > { %v1303_v23 = vpop.f32.mrf.mxu1  ;;  %v2840_v41 = vld [vmem:[#allocation3 + $0x4] sm:$0xf]  ;;  %v2672_v45 = vld [vmem:[#allocation3 + $0x8] sm:$0xf] }
 0x3d1   : > { %1338 = vst [vmem:[#allocation3 + $0x18] sm:$0xff] %v1334_v22 }
 0x3d8   : > { %v1305_v33 = vpop.f32.mrf.mxu1  ;;  %v2666_v40 = vld [vmem:[#allocation3 + $0x14] sm:$0xf0]  ;;  %v2843_v43 = vld [vmem:[#allocation3 + $0x18] sm:$0xf0] }
 0x3d9   : > { %v1289_v24 = vpop.f32.mrf.mxu0  ;;  %v2669_v42 = vor.u32 %v2840_v41, %v2666_v40  ;;  %v3480_v46 = vor.u32 %v2843_v43, %v2672_v45 }
 0x3da   : > { %v1290_v25 = vadd.f32 %v1289_v24, %v1079_v55 }
 0x3dc   : > { %v1304_v26 = vadd.f32 %v1303_v23, %v1290_v25 }
 0x3de   : > { %v1310_v28 = vmax.f32 %v1304_v26, 0.0 }
 0x3e0   : > { %v1324_v29 = vmul.f32 %v1318_v27, %v1310_v28 }
 0x3e1   : > { %v1291_v30 = vpop.f32.mrf.mxu0 }
 0x3e2   : > { %v1333_v31 = vpack.c.bf16 %v1324_v29, %v1324_v29  ;;  %v1292_v32 = vadd.f32 %v1291_v30, %v1084_v6 }
 0x3e4   : > { %1337 = vst.msk [vmem:[#allocation3 + $0xc] sm:$0xf] %vm975_vm13, %v1333_v31  ;;  %v1306_v34 = vadd.f32 %v1305_v33, %v1292_v32  ;;  %v1453_v32 = vld [vmem:[%s3963_s7 + $0x8] sm:$0xff] }
 0x3e6   : > { %v1313_v35 = vmax.f32 %v1306_v34, 0.0 }
 0x3e8   : > { %v1327_v36 = vmul.f32 %v1318_v27, %v1313_v35 }
 0x3ea   : > { %v1335_v62 = vpack.c.bf16 %v1327_v36, %v1327_v36 }
 0x3eb   : > { %v2841_v37 = vld [vmem:[#allocation3 + $0xc] sm:$0xf] }
 0x3ec   : > { %1339 = vst.msk [vmem:[#allocation3 + $0x20] sm:$0xf] %vm975_vm13, %v1335_v62 }
 0x3f3   : > { %v2674_v38 = vld [vmem:[#allocation3 + $0x1c] sm:$0xf0] }
 0x3f4   : > { %v3461_v39 = vor.u32 %v2841_v37, %v2674_v38 }
 0x3f6   : > { %1407 = vrot.lane.b32.xlu0 %v3461_v39, %s4010_s21  ;;  %1415 = vrot.lane.b32.xlu2 %v3461_v39, %s4011_s23 }
 0x3f7   : > { %1423 = vrot.lane.b32.xlu1 %v3461_v39, %s4012_s24 }
 0x3fe   : > { %1368 = vrot.lane.b32.xlu0 %v3461_v39, %s3990_s29  ;;  %1379 = vrot.lane.b32.xlu2 %v3461_v39, %s3992_s28 }
 0x3ff   : > { %1399 = vrot.lane.b32.xlu1 %v3461_v39, %s4006_s2 }
 0x406   : > { %1431 = vrot.lane.b32.xlu0 %v3461_v39, %s4007_s3  ;;  %1419 = vrot.lane.b32.xlu2 %v2669_v42, %s4012_s24 }
 0x407   : > { %1390 = vrot.lane.b32.xlu1 %v3461_v39, %s3994_s27 }
 0x40e   : > { %1421 = vrot.lane.b32.xlu0 %v3480_v46, %s4012_s24  ;;  %1413 = vrot.lane.b32.xlu2 %v3480_v46, %s4011_s23 }
 0x40f   : > { %1411 = vrot.lane.b32.xlu1 %v2669_v42, %s4011_s23 }
 0x416   : > { %1403 = vrot.lane.b32.xlu0 %v2669_v42, %s4010_s21  ;;  %1395 = vrot.lane.b32.xlu2 %v2669_v42, %s4006_s2 }
 0x417   : > { %1405 = vrot.lane.b32.xlu1 %v3480_v46, %s4010_s21 }
 0x41e   : > { %1397 = vrot.lane.b32.xlu0 %v3480_v46, %s4006_s2  ;;  %1377 = vrot.lane.b32.xlu2 %v3480_v46, %s3992_s28 }
 0x41f   : > { %1388 = vrot.lane.b32.xlu1 %v3480_v46, %s3994_s27 }
 0x426   : > { %1386 = vrot.lane.b32.xlu0 %v2669_v42, %s3994_s27  ;;  %1364 = vrot.lane.b32.xlu2 %v2669_v42, %s3990_s29  ;;  %s4013_s27 = smov 110  }
 0x427   : > { %1375 = vrot.lane.b32.xlu1 %v2669_v42, %s3992_s28  ;;  %s2927_s28 = smov 107  }
 0x42e   : > { %1366 = vrot.lane.b32.xlu0 %v3480_v46, %s3990_s29  ;;  %1427 = vrot.lane.b32.xlu2 %v2669_v42, %s4007_s3 }
 0x436   : > { %1429 = vrot.lane.b32.xlu0 %v3480_v46, %s4007_s3 }
 0x43e   : > { %1475 = vrot.lane.b32.xlu0 %v2669_v42, %s4009_s26 }
 0x450   : > { %v1416_v50 = vpop.permute.xlu2 %1415 }
 0x451   : > { %1527 = vrot.lane.b32.xlu0 %v1416_v50, %s4009_s26 }
 0x458   : > { %v3509_v47 = vpop.permute.xlu2 %1379 }
 0x460   : > { %v1420_v54 = vpop.permute.xlu2 %1419 }
 0x468   : > { %v1414_v55 = vpop.permute.xlu2 %1413  ;;  %v1408_v56 = vpop.permute.xlu0 %1407 }
 0x469   : > { %v1424_v57 = vpop.permute.xlu1 %1423  ;;  %1519 = vrot.lane.b32.xlu1 %v1408_v56, %s4009_s26  ;;  %v1418_v11 = vsel %vm686_vm3, %v1414_v55, %v1416_v50 }
 0x46a   : > { %1535 = vrot.lane.b32.xlu2 %v1424_v57, %s4009_s26 }
 0x470   : > { %v1369_v58 = vpop.permute.xlu0 %1368  ;;  %v1396_v60 = vpop.permute.xlu2 %1395 }
 0x471   : > { %v1400_v59 = vpop.permute.xlu1 %1399  ;;  %1529 = vrot.lane.b32.xlu1 %v1420_v54, %s4009_s26 }
 0x472   : > { %1511 = vrot.lane.b32.xlu2 %v1400_v59, %s4009_s26 }
 0x478   : > { %v3515_v61 = vpop.permute.xlu0 %1431  ;;  %v1378_v0 = vpop.permute.xlu2 %1377 }
 0x479   : > { %v1391_v63 = vpop.permute.xlu1 %1390  ;;  %v1383_v27 = vsel %vm646_vm5, %v1378_v0, %v3509_v47 }
 0x47a   : > { %1505 = vrot.lane.b32.xlu2 %v1396_v60, %s4009_s26 }
 0x480   : > { %v1422_v1 = vpop.permute.xlu0 %1421  ;;  %v1365_v51 = vpop.permute.xlu2 %1364 }
 0x481   : > { %v1412_v2 = vpop.permute.xlu1 %1411  ;;  %v1425_v4 = vsel %vm695_vm0, %v1420_v54, %v1422_v1  ;;  %v1426_v12 = vsel %vm695_vm0, %v1422_v1, %v1424_v57  ;;  %v1370_v19 = vsel %vm634_vm7, %v1363_v53, %v1365_v51 }
 0x482   : > { %1521 = vrot.lane.b32.xlu1 %v1412_v2, %s4009_s26  ;;  %1531 = vrot.lane.b32.xlu2 %v1425_v4, %s4009_s26  ;;  %v1417_v6 = vsel %vm686_vm3, %v1412_v2, %v1414_v55 }
 0x488   : > { %v1404_v5 = vpop.permute.xlu0 %1403  ;;  %v1428_v9 = vpop.permute.xlu2 %1427 }
 0x489   : > { %v1406_v7 = vpop.permute.xlu1 %1405  ;;  %1513 = vrot.lane.b32.xlu0 %v1404_v5, %s4009_s26 }
 0x48a   : > { %v1409_v8 = vsel %vm677_vm1, %v1404_v5, %v1406_v7  ;;  %1523 = vrot.lane.b32.xlu2 %v1417_v6, %s4009_s26  ;;  %v1410_v21 = vsel %vm677_vm1, %v1406_v7, %v1408_v56  ;;  %v2680_v6 = vld [vmem:[%s3962_s6] sm:$0xf]  ;;  %v2845_v7 = vld [vmem:[%s3962_s6 + $0x4] sm:$0xf0] }
 0x48b   : > { %1515 = vrot.lane.b32.xlu1 %v1409_v8, %s4009_s26 }
 0x490   : > { %v1398_v10 = vpop.permute.xlu0 %1397 }
 0x491   : > { %v1389_v3 = vpop.permute.xlu1 %1388  ;;  %1537 = vrot.lane.b32.xlu0 %v1428_v9, %s4009_s26  ;;  %v1401_v13 = vsel %vm668_vm2, %v1396_v60, %v1398_v10  ;;  %v1402_v24 = vsel %vm668_vm2, %v1398_v10, %v1400_v59  ;;  %v2681_v10 = vor.u32 %v2845_v7, %v2680_v6 }
 0x492   : > { %1525 = vrot.lane.b32.xlu2 %v1418_v11, %s4009_s26  ;;  %v1394_v29 = vsel %vm658_vm4, %v1389_v3, %v1391_v63 }
 0x493   : > { %1533 = vrot.lane.b32.xlu1 %v1426_v12, %s4009_s26  ;;  %v2682_v12 = vld [vmem:[%s3962_s6 + $0x8] sm:$0xf0] }
 0x498   : > { %v1387_v14 = vpop.permute.xlu0 %1386 }
 0x499   : > { %v1376_v15 = vpop.permute.xlu1 %1375  ;;  %v1393_v16 = vsel %vm658_vm4, %v1387_v14, %v1389_v3  ;;  %1507 = vrot.lane.b32.xlu0 %v1401_v13, %s4009_s26  ;;  %v1392_v18 = vsel %vm658_vm4, %v1385_v48, %v1387_v14  ;;  %v2844_v3 = vld [vmem:[%s3962_s6 + $0x4] sm:$0xf] }
 0x49a   : > { %v1382_v17 = vsel %vm646_vm5, %v1376_v15, %v1378_v0  ;;  %v1381_v20 = vsel %vm646_vm5, %v1374_v52, %v1376_v15  ;;  %v2685_v15 = vor.u32 %v2844_v3, %v2682_v12 }
 0x49b   : > { %1491 = vrot.lane.b32.xlu2 %v1382_v17, %s4009_s26  ;;  %1499 = vrot.lane.b32.xlu1 %v1393_v16, %s4009_s26 }
 0x4a0   : > { %v1367_v22 = vpop.permute.xlu0 %1366 }
 0x4a1   : > { %1497 = vrot.lane.b32.xlu0 %v1392_v18, %s4009_s26  ;;  %v1371_v23 = vsel %vm634_vm7, %v1365_v51, %v1367_v22  ;;  %v1372_v25 = vsel %vm634_vm7, %v1367_v22, %v1369_v58 }
 0x4a3   : > { %1481 = vrot.lane.b32.xlu2 %v1370_v19, %s4009_s26  ;;  %1489 = vrot.lane.b32.xlu1 %v1381_v20, %s4009_s26 }
 0x4a8   : > { %v1430_v26 = vpop.permute.xlu0 %1429 }
 0x4a9   : > { %1517 = vrot.lane.b32.xlu0 %v1410_v21, %s4009_s26  ;;  %v1433_v28 = vsel %vm704_vm6, %v1428_v9, %v1430_v26  ;;  %v1434_v31 = vsel %vm704_vm6, %v1430_v26, %v3515_v61 }
 0x4ab   : > { %1503 = vrot.lane.b32.xlu2 %v1391_v63, %s4009_s26  ;;  %1495 = vrot.lane.b32.xlu1 %v3509_v47, %s4009_s26 }
 0x4b0   : > { %v3581_v38 = vpop.permute.xlu0 %1475 }
 0x4b1   : > { %1483 = vrot.lane.b32.xlu0 %v1371_v23, %s4009_s26  ;;  %v1545_v9 = vsel %vm800_vm8, %v3506_v49, %v3581_v38  ;;  %v1452_v49 = vld [vmem:[%s3963_s7] sm:$0xff] }
 0x4b3   : > { %1509 = vrot.lane.b32.xlu1 %v1402_v24, %s4009_s26  ;;  %1485 = vrot.lane.b32.xlu2 %v1372_v25, %s4009_s26 }
 0x4b9   : > { %1493 = vrot.lane.b32.xlu0 %v1383_v27, %s4009_s26 }
 0x4bb   : > { %1479 = vrot.lane.b32.xlu2 %v3461_v39, %s4009_s26  ;;  %1539 = vrot.lane.b32.xlu1 %v1433_v28, %s4009_s26 }
 0x4c1   : > { %1487 = vrot.lane.b32.xlu0 %v1369_v58, %s4009_s26 }
 0x4c3   : > { %1501 = vrot.lane.b32.xlu1 %v1394_v29, %s4009_s26  ;;  %v1528_v39 = vpop.permute.xlu0 %1527  ;;  %1456 = vperm.xlu2 %2905, %v1452_v49  }
 0x4c4   : > { %v3564_v30 = vpop.permute.xlu2 %1535 }
 0x4c9   : > { %1541 = vrot.lane.b32.xlu0 %v1434_v31, %s4009_s26 }
 0x4cb   : > { %1477 = vrot.lane.b32.xlu1 %v3480_v46, %s4009_s26 }
 0x4cc   : > { %v3574_v33 = vpop.permute.xlu2 %1511 }
 0x4d1   : > { %1461 = vperm.xlu0 %2903, %v1453_v32  }
 0x4d3   : > { %1543 = vrot.lane.b32.xlu1 %v3515_v61, %s4009_s26 }
 0x4d4   : > { %v1506_v34 = vpop.permute.xlu2 %1505 }
 0x4db   : > { %v3578_v35 = vpop.permute.xlu1 %1519 }
 0x4dc   : > { %v1532_v36 = vpop.permute.xlu2 %1531 }
 0x4e3   : > { %v1530_v62 = vpop.permute.xlu1 %1529 }
 0x4e4   : > { %v1566_v37 = vsel %vm800_vm8, %v1530_v62, %v1532_v36  ;;  %v1524_v40 = vpop.permute.xlu2 %1523 }
 0x4e5   : > { %1602 = vmatpush.bf16.msrb.mxu3 %v1566_v37  ;;  %v2691_v37 = vld [vmem:[#allocation4] sm:$0xf] }
 0x4ec   : > { %v1526_v52 = vpop.permute.xlu2 %1525 }
 0x4ed   : > { %v1564_v53 = vsel %vm800_vm8, %v1524_v40, %v1526_v52  ;;  %v1565_v18 = vsel %vm800_vm8, %v1526_v52, %v1528_v39 }
 0x4f4   : > { %v1522_v41 = vpop.permute.xlu1 %1521 }
 0x4f5   : > { %v1563_v42 = vsel %vm800_vm8, %v1522_v41, %v1524_v40  ;;  %v1492_v60 = vpop.permute.xlu2 %1491  ;;  %v980_v41 = vld [vmem:[#allocation2 + $0x8] sm:$0xff] }
 0x4f6   : > { %1603 = vmatpush.bf16.msrb.mxu3 %v1563_v42 }
 0x4fb   : > { %v1514_v43 = vpop.permute.xlu0 %1513 }
 0x4fd   : > { %v1516_v45 = vpop.permute.xlu1 %1515  ;;  %v1482_v2 = vpop.permute.xlu2 %1481 }
 0x4fe   : > { %v1560_v46 = vsel %vm800_vm8, %v1514_v43, %v1516_v45  ;;  %v979_v43 = vld [vmem:[#allocation2] sm:$0xff] }
 0x4ff   : > { %1604 = vmatpush.bf16.msrb.mxu3 %v1560_v46 }
 0x503   : > { %v1538_v48 = vpop.permute.xlu0 %1537 }
 0x505   : > { %v1534_v50 = vpop.permute.xlu1 %1533  ;;  %v1504_v17 = vpop.permute.xlu2 %1503 }
 0x506   : > { %v1567_v47 = vsel %vm800_vm8, %v1532_v36, %v1534_v50  ;;  %v1568_v16 = vsel %vm800_vm8, %v1534_v50, %v3564_v30  ;;  %v1435_v50 = vrot.slane %v979_v43, 4 }
 0x507   : > { %1630 = vmatpush.bf16.msra.mxu1 %v1567_v47 }
 0x50b   : > { %1631 = vmatpush.bf16.msra.mxu1 %v1564_v53  ;;  %v1508_v54 = vpop.permute.xlu0 %1507  ;;  %v982_v53 = vld [vmem:[#allocation2 + $0x1c] sm:$0xff] }
 0x50c   : > { %v1557_v55 = vsel %vm800_vm8, %v1506_v34, %v1508_v54 }
 0x50d   : > { %v1500_v56 = vpop.permute.xlu1 %1499  ;;  %1605 = vmatpush.bf16.msrb.mxu3 %v1557_v55  ;;  %v1486_v27 = vpop.permute.xlu2 %1485 }
 0x513   : > { %v1498_v57 = vpop.permute.xlu0 %1497 }
 0x514   : > { %v1554_v58 = vsel %vm800_vm8, %v1498_v57, %v1500_v56  ;;  %v1438_v57 = vrot.slane %v982_v53, 4 }
 0x515   : > { %v1490_v59 = vpop.permute.xlu1 %1489  ;;  %1606 = vmatpush.bf16.msrb.mxu3 %v1554_v58  ;;  %v1480_v36 = vpop.permute.xlu2 %1479 }
 0x516   : > { %v1551_v61 = vsel %vm800_vm8, %v1490_v59, %v1492_v60 }
 0x519   : > { %1607 = vmatpush.bf16.msrb.mxu3 %v1551_v61  ;;  %v1698_v61 = vld [vmem:[%s3964_s8] sm:$0x7] }
 0x51a   : > { %v1700_v6 = vperm.slane %v1698_v61, 0 }
 0x51b   : > { %v1518_v63 = vpop.permute.xlu0 %1517 }
 0x51c   : > { %v1561_v0 = vsel %vm800_vm8, %v1516_v45, %v1518_v63  ;;  %v1562_v22 = vsel %vm800_vm8, %v1518_v63, %v3578_v35  ;;  %v1436_v45 = vrot.slane %v980_v41, 4 }
 0x51d   : > { %v1496_v1 = vpop.permute.xlu1 %1495  ;;  %1632 = vmatpush.bf16.msra.mxu1 %v1561_v0  ;;  %v1457_v42 = vpop.permute.xlu2 %1456 }
 0x51e   : > { %v1440_v47 = vsel %vm1439_vm14, %v1435_v50, %v1436_v45 }
 0x523   : > { %v1484_v4 = vpop.permute.xlu0 %1483 }
 0x524   : > { %v1548_v51 = vsel %vm800_vm8, %v1482_v2, %v1484_v4  ;;  %v1549_v29 = vsel %vm800_vm8, %v1484_v4, %v1486_v27 }
 0x525   : > { %v1510_v5 = vpop.permute.xlu1 %1509  ;;  %1608 = vmatpush.bf16.msrb.mxu3 %v1548_v51  ;;  %v1447_v51 = vunpack.c.h.bf16 %v1440_v47 }
 0x526   : > { %v1558_v8 = vsel %vm800_vm8, %v1508_v54, %v1510_v5  ;;  %v1559_v24 = vsel %vm800_vm8, %v1510_v5, %v3574_v33  ;;  %v1446_v54 = vunpack.c.l.bf16 %v1440_v47 }
 0x527   : > { %1633 = vmatpush.bf16.msra.mxu1 %v1558_v8 }
 0x529   : > { %1609 = vmatpush.bf16.msrb.mxu3 %v1545_v9 }
 0x52b   : > { %v1494_v11 = vpop.permute.xlu0 %1493 }
 0x52c   : > { %1610 = vmatmul.bf16.vlgmr.msrb.gmra.mxu3 %v2681_v10  ;;  %v1552_v23 = vsel %vm800_vm8, %v1492_v60, %v1494_v11  ;;  %v1553_v32 = vsel %vm800_vm8, %v1494_v11, %v1496_v1  ;;  %v1701_v11 = vperm.slane %v1698_v61, 1 }
 0x52d   : > { %v1540_v13 = vpop.permute.xlu1 %1539 }
 0x52e   : > { %v1569_v14 = vsel %vm800_vm8, %v1538_v48, %v1540_v13 }
 0x52f   : > { %1623 = vmatpush.bf16.msra.mxu2 %v1569_v14 }
 0x532   : > { %2686 = vmatmul.msk.bf16.vlgmr.msra.gmra.mxu2 %vm855_vm9, %v2685_v15 }
 0x533   : > { %1658 = vmatpush.bf16.msrb.mxu2 %v1568_v16  ;;  %v1488_v19 = vpop.permute.xlu0 %1487 }
 0x534   : > { %v1550_v35 = vsel %vm800_vm8, %v1486_v27, %v1488_v19 }
 0x535   : > { %v1502_v20 = vpop.permute.xlu1 %1501 }
 0x536   : > { %v1555_v21 = vsel %vm800_vm8, %v1500_v56, %v1502_v20  ;;  %v1556_v30 = vsel %vm800_vm8, %v1502_v20, %v1504_v17  ;;  %v981_v56 = vld [vmem:[#allocation2 + $0x14] sm:$0xff] }
 0x537   : > { %1659 = vmatpush.bf16.msrb.mxu2 %v1565_v18  ;;  %1634 = vmatpush.bf16.msra.mxu1 %v1555_v21  ;;  %v1437_v1 = vrot.slane %v981_v56, 4 }
 0x539   : > { %v1441_v7 = vsel %vm1439_vm14, %v1437_v1, %v1438_v57 }
 0x53a   : > { %v1449_v3 = vunpack.c.l.bf16 %v1441_v7  ;;  %v1450_v19 = vunpack.c.h.bf16 %v1441_v7 }
 0x53b   : > { %1660 = vmatpush.bf16.msrb.mxu2 %v1562_v22  ;;  %1635 = vmatpush.bf16.msra.mxu1 %v1552_v23  ;;  %v1542_v25 = vpop.permute.xlu0 %1541 }
 0x53c   : > { %v1570_v26 = vsel %vm800_vm8, %v1540_v13, %v1542_v25 }
 0x53d   : > { %v1478_v28 = vpop.permute.xlu1 %1477  ;;  %1651 = vmatpush.bf16.msrb.mxu0 %v1570_v26 }
 0x53e   : > { %v1546_v31 = vsel %vm800_vm8, %v3581_v38, %v1478_v28  ;;  %v1547_v62 = vsel %vm800_vm8, %v1478_v28, %v1480_v36  ;;  %v2848_v38 = vld [vmem:[#allocation4 + $0x10] sm:$0xf0] }
 0x53f   : > { %1661 = vmatpush.bf16.msrb.mxu2 %v1559_v24  ;;  %1636 = vmatpush.bf16.msra.mxu1 %v1549_v29  ;;  %v2692_v39 = vor.u32 %v2848_v38, %v2691_v37  ;;  %v1448_v29 = vunpack.c.l.bf16 %v1436_v45 }
 0x540   : > { %2687 = vmatmul.msk.bf16.vlgmr.msrb.gmra.mxu0 %vm855_vm9, %v2685_v15 }
 0x541   : > { %1768 = vrot.lane.b32.xlu1 %v2692_v39, %s4013_s27  ;;  %1757 = vrot.lane.b32.xlu2 %v2692_v39, %s4014_s1 }
 0x542   : > { %1746 = vrot.lane.b32.xlu0 %v2692_v39, %s4015_s25 }
 0x543   : > { %1662 = vmatpush.bf16.msrb.mxu2 %v1556_v30  ;;  %1637 = vmatpush.bf16.msra.mxu1 %v1546_v31  ;;  %v1462_v0 = vpop.permute.xlu0 %1461 }
 0x545   : > { %v1544_v33 = vpop.permute.xlu1 %1543 }
 0x546   : > { %v1571_v34 = vsel %vm800_vm8, %v1542_v25, %v1544_v33  ;;  %1638 = vmatmul.bf16.vlgmr.msra.gmra.mxu1 %v2681_v10  ;;  %v1702_v33 = vperm.slane %v1698_v61, 2 }
 0x547   : > { %1663 = vmatpush.bf16.msrb.mxu2 %v1553_v32  ;;  %1679 = vmatpush.bf16.msra.mxu3 %v1571_v34 }
 0x549   : > { %1828 = vrot.lane.b32.xlu1 %v2692_v39, %s4009_s26  ;;  %v1451_v39 = vunpack.c.l.bf16 %v1438_v57 }
 0x54a   : > { %2688 = vmatmul.msk.bf16.vlgmr.msra.gmra.mxu3 %vm855_vm9, %v2685_v15 }
 0x54b   : > { %1664 = vmatpush.bf16.msrb.mxu2 %v1550_v35 }
 0x54f   : > { %1665 = vmatpush.bf16.msrb.mxu2 %v1547_v62 }
 0x552   : > { %1666 = vmatmul.bf16.vlgmr.msrb.gmra.mxu2 %v2681_v10 }
 0x59b   : > { %v1758_v57 = vpop.permute.xlu2 %1757 }
 0x5af   : > { %v1611_v40 = vpop.f32.mrf.mxu3 }
 0x5b0   : > { %v1612_v48 = vadd.f32 %v1611_v40, %v1457_v42 }
 0x5b5   : > { %v1625_v46 = vpop.f32.mrf.mxu2 }
 0x5b6   : > { %v1626_v52 = vadd.f32 %v1625_v46, %v1612_v48 }
 0x5b7   : > { %v1613_v55 = vpop.f32.mrf.mxu3 }
 0x5b8   : > { %v1686_v60 = vadd.f32 %v1626_v52, %v1446_v54  ;;  %v1614_v4 = vadd.f32 %v1613_v55, %v1462_v0 }
 0x5ba   : > { %v1692_v8 = vmax.f32 %v1686_v60, 0.0 }
 0x5bc   : > { %v1706_v14 = vmul.f32 %v1700_v6, %v1692_v8 }
 0x5bd   : > { %v1653_v58 = vpop.f32.mrf.mxu0  ;;  %v1627_v2 = vpop.f32.mrf.mxu2 }
 0x5be   : > { %v1628_v9 = vadd.f32 %v1627_v2, %v1614_v4 }
 0x5c0   : > { %v1689_v15 = vadd.f32 %v1628_v9, %v1449_v3 }
 0x5c2   : > { %v1695_v21 = vmax.f32 %v1689_v15, 0.0 }
 0x5c3   : > { %v1639_v59 = vpop.f32.mrf.mxu1 }
 0x5c4   : > { %v1640_v63 = vadd.f32 %v1639_v59, %v1457_v42  ;;  %v1709_v27 = vmul.f32 %v1700_v6, %v1695_v21  ;;  %v1769_v59 = vpop.permute.xlu1 %1768 }
 0x5c5   : > { %v1655_v17 = vpop.f32.mrf.mxu0 }
 0x5c6   : > { %v1654_v5 = vadd.f32 %v1653_v58, %v1640_v63  ;;  %v1747_v63 = vpop.permute.xlu0 %1746 }
 0x5c8   : > { %v1687_v10 = vadd.f32 %v1654_v5, %v1447_v51 }
 0x5ca   : > { %v1693_v12 = vmax.f32 %v1687_v10, 0.0 }
 0x5cb   : > { %v1641_v13 = vpop.f32.mrf.mxu1 }
 0x5cc   : > { %v1707_v16 = vmul.f32 %v1701_v11, %v1693_v12  ;;  %v1642_v49 = vadd.f32 %v1641_v13, %v1462_v0  ;;  %v3702_v61 = vpop.permute.xlu1 %1828 }
 0x5cd   : > { %v1681_v23 = vpop.f32.mrf.mxu3 }
 0x5ce   : > { %v1716_v18 = vpack.c.bf16 %v1707_v16, %v1706_v14  ;;  %v1656_v20 = vadd.f32 %v1655_v17, %v1642_v49 }
 0x5d0   : > { %1720 = vst [vmem:[#allocation4 + $0x4] sm:$0xff] %v1716_v18  ;;  %v1690_v22 = vadd.f32 %v1656_v20, %v1450_v19 }
 0x5d2   : > { %v1696_v24 = vmax.f32 %v1690_v22, 0.0 }
 0x5d4   : > { %v1710_v28 = vmul.f32 %v1701_v11, %v1696_v24 }
 0x5d5   : > { %v1667_v25 = vpop.f32.mrf.mxu2  ;;  %v1683_v36 = vpop.f32.mrf.mxu3 }
 0x5d6   : > { %v1668_v26 = vadd.f32 %v1667_v25, %v1457_v42  ;;  %v1718_v31 = vpack.c.bf16 %v1710_v28, %v1709_v27 }
 0x5d7   : > { %v2846_v41 = vld [vmem:[#allocation4 + $0x4] sm:$0xf]  ;;  %v2699_v43 = vld [vmem:[#allocation4 + $0x8] sm:$0xf] }
 0x5d8   : > { %v1682_v30 = vadd.f32 %v1681_v23, %v1668_v26  ;;  %1722 = vst [vmem:[#allocation4 + $0x18] sm:$0xff] %v1718_v31 }
 0x5da   : > { %v1688_v32 = vadd.f32 %v1682_v30, %v1448_v29 }
 0x5dc   : > { %v1694_v34 = vmax.f32 %v1688_v32, 0.0 }
 0x5dd   : > { %v1669_v35 = vpop.f32.mrf.mxu2 }
 0x5de   : > { %v1708_v62 = vmul.f32 %v1702_v33, %v1694_v34  ;;  %v1670_v37 = vadd.f32 %v1669_v35, %v1462_v0 }
 0x5df   : > { %v2693_v46 = vld [vmem:[#allocation4 + $0x14] sm:$0xf0]  ;;  %v2849_v42 = vld [vmem:[#allocation4 + $0x18] sm:$0xf0] }
 0x5e0   : > { %v1717_v38 = vpack.c.bf16 %v1708_v62, %v1708_v62  ;;  %v1684_v40 = vadd.f32 %v1683_v36, %v1670_v37  ;;  %v3643_v48 = vor.u32 %v2846_v41, %v2693_v46  ;;  %v3645_v50 = vor.u32 %v2849_v42, %v2699_v43  ;;  %v2294_v37 = vld [vmem:[%s3966_s10] sm:$0xff] }
 0x5e2   : > { %1721 = vst.msk [vmem:[#allocation4 + $0xc] sm:$0xf] %vm975_vm13, %v1717_v38  ;;  %v1691_v45 = vadd.f32 %v1684_v40, %v1451_v39  ;;  %1772 = vrot.lane.b32.xlu0 %v3645_v50, %s4013_s27  ;;  %1805 = vrot.lane.b32.xlu2 %v3645_v50, %s4012_s24  ;;  %v2295_v38 = vld [vmem:[%s3966_s10 + $0x8] sm:$0xff] }
 0x5e3   : > { %1803 = vrot.lane.b32.xlu1 %v3643_v48, %s4012_s24 }
 0x5e4   : > { %v1697_v47 = vmax.f32 %v1691_v45, 0.0 }
 0x5e6   : > { %v1711_v52 = vmul.f32 %v1702_v33, %v1697_v47 }
 0x5e8   : > { %v1719_v53 = vpack.c.bf16 %v1711_v52, %v1711_v52 }
 0x5e9   : > { %v2847_v54 = vld [vmem:[#allocation4 + $0xc] sm:$0xf] }
 0x5ea   : > { %1723 = vst.msk [vmem:[#allocation4 + $0x20] sm:$0xf] %vm975_vm13, %v1719_v53  ;;  %1797 = vrot.lane.b32.xlu2 %v3645_v50, %s4011_s23  ;;  %1759 = vrot.lane.b32.xlu0 %v3643_v48, %s4014_s1 }
 0x5eb   : > { %1795 = vrot.lane.b32.xlu1 %v3643_v48, %s4011_s23 }
 0x5f1   : > { %v2701_v55 = vld [vmem:[#allocation4 + $0x1c] sm:$0xf0] }
 0x5f2   : > { %v3660_v56 = vor.u32 %v2847_v54, %v2701_v55  ;;  %1789 = vrot.lane.b32.xlu2 %v3645_v50, %s4010_s21 }
 0x5f3   : > { %1787 = vrot.lane.b32.xlu1 %v3643_v48, %s4010_s21 }
 0x5f4   : > { %1807 = vrot.lane.b32.xlu0 %v3660_v56, %s4012_s24  ;;  %s2931_s24 = smov 11  }
 0x5fa   : > { %1781 = vrot.lane.b32.xlu2 %v3645_v50, %s4006_s2 }
 0x5fb   : > { %1779 = vrot.lane.b32.xlu1 %v3643_v48, %s4006_s2 }
 0x5fc   : > { %1799 = vrot.lane.b32.xlu0 %v3660_v56, %s4011_s23 }
 0x602   : > { %1770 = vrot.lane.b32.xlu2 %v3643_v48, %s4013_s27 }
 0x603   : > { %1761 = vrot.lane.b32.xlu1 %v3645_v50, %s4014_s1 }
 0x604   : > { %1791 = vrot.lane.b32.xlu0 %v3660_v56, %s4010_s21 }
 0x60a   : > { %1750 = vrot.lane.b32.xlu2 %v3645_v50, %s4015_s25 }
 0x60b   : > { %1748 = vrot.lane.b32.xlu1 %v3643_v48, %s4015_s25 }
 0x60c   : > { %1783 = vrot.lane.b32.xlu0 %v3660_v56, %s4006_s2  ;;  %s2928_s2 = smov 118  }
 0x612   : > { %1813 = vrot.lane.b32.xlu2 %v3645_v50, %s4007_s3 }
 0x613   : > { %1811 = vrot.lane.b32.xlu1 %v3643_v48, %s4007_s3 }
 0x614   : > { %1752 = vrot.lane.b32.xlu0 %v3660_v56, %s4015_s25 }
 0x61a   : > { %1830 = vrot.lane.b32.xlu2 %v3643_v48, %s4009_s26 }
 0x61b   : > { %1774 = vrot.lane.b32.xlu1 %v3660_v56, %s4013_s27 }
 0x61c   : > { %1815 = vrot.lane.b32.xlu0 %v3660_v56, %s4007_s3  ;;  %s2929_s3 = smov 117  }
 0x622   : > { %1763 = vrot.lane.b32.xlu2 %v3660_v56, %s4014_s1 }
 0x63c   : > { %v1806_v58 = vpop.permute.xlu2 %1805 }
 0x644   : > { %v3700_v60 = vpop.permute.xlu2 %1797 }
 0x64c   : > { %v3704_v0 = vpop.permute.xlu2 %1789 }
 0x654   : > { %v1773_v2 = vpop.permute.xlu0 %1772  ;;  %v3709_v51 = vpop.permute.xlu2 %1781 }
 0x655   : > { %v1804_v1 = vpop.permute.xlu1 %1803 }
 0x656   : > { %v1809_v4 = vsel %vm695_vm0, %v1804_v1, %v1806_v58  ;;  %1884 = vrot.lane.b32.xlu1 %v1804_v1, %s4009_s26 }
 0x657   : > { %1886 = vrot.lane.b32.xlu2 %v1809_v4, %s4009_s26 }
 0x65c   : > { %v1760_v7 = vpop.permute.xlu0 %1759  ;;  %v1771_v8 = vpop.permute.xlu2 %1770 }
 0x65d   : > { %v1796_v5 = vpop.permute.xlu1 %1795  ;;  %v1776_v15 = vsel %vm658_vm4, %v1769_v59, %v1771_v8  ;;  %v1777_v49 = vsel %vm658_vm4, %v1771_v8, %v1773_v2  ;;  %v1765_v23 = vsel %vm646_vm5, %v1758_v57, %v1760_v7 }
 0x65e   : > { %v1801_v6 = vsel %vm686_vm3, %v1796_v5, %v3700_v60  ;;  %1876 = vrot.lane.b32.xlu1 %v1796_v5, %s4009_s26 }
 0x65f   : > { %1878 = vrot.lane.b32.xlu2 %v1801_v6, %s4009_s26 }
 0x664   : > { %v1751_v12 = vpop.permute.xlu2 %1750 }
 0x665   : > { %v1788_v9 = vpop.permute.xlu1 %1787 }
 0x666   : > { %v1793_v10 = vsel %vm677_vm1, %v1788_v9, %v3704_v0  ;;  %1868 = vrot.lane.b32.xlu1 %v1788_v9, %s4009_s26  ;;  %v1808_v11 = vpop.permute.xlu0 %1807 }
 0x667   : > { %1870 = vrot.lane.b32.xlu2 %v1793_v10, %s4009_s26  ;;  %v1810_v32 = vsel %vm695_vm0, %v1806_v58, %v1808_v11  ;;  %vm2226_vm0 = vcmask 556032  }
 0x66c   : > { %v1814_v18 = vpop.permute.xlu2 %1813 }
 0x66d   : > { %v1780_v3 = vpop.permute.xlu1 %1779 }
 0x66e   : > { %v1785_v13 = vsel %vm668_vm2, %v1780_v3, %v3709_v51  ;;  %1860 = vrot.lane.b32.xlu1 %v1780_v3, %s4009_s26  ;;  %v1800_v14 = vpop.permute.xlu0 %1799 }
 0x66f   : > { %1862 = vrot.lane.b32.xlu2 %v1785_v13, %s4009_s26  ;;  %v1802_v35 = vsel %vm686_vm3, %v3700_v60, %v1800_v14 }
 0x674   : > { %v3735_v24 = vpop.permute.xlu2 %1830 }
 0x675   : > { %v1762_v16 = vpop.permute.xlu1 %1761 }
 0x676   : > { %v1766_v17 = vsel %vm646_vm5, %v1760_v7, %v1762_v16  ;;  %1852 = vrot.lane.b32.xlu1 %v1776_v15, %s4009_s26  ;;  %v1792_v19 = vpop.permute.xlu0 %1791  ;;  %v1900_v7 = vsel %vm800_vm8, %v3702_v61, %v3735_v24  ;;  %v2707_v61 = vld [vmem:[%s3965_s9] sm:$0xf] }
 0x677   : > { %1854 = vrot.lane.b32.xlu2 %v1777_v49, %s4009_s26  ;;  %1846 = vrot.lane.b32.xlu0 %v1766_v17, %s4009_s26  ;;  %v1794_v62 = vsel %vm677_vm1, %v3704_v0, %v1792_v19  ;;  %v2851_v17 = vld [vmem:[%s3965_s9 + $0x4] sm:$0xf0]  ;;  %vm2355_vm1 = vcmask 1044256  }
 0x67c   : > { %v1764_v27 = vpop.permute.xlu2 %1763 }
 0x67d   : > { %v1749_v20 = vpop.permute.xlu1 %1748  ;;  %v1767_v30 = vsel %vm646_vm5, %v1762_v16, %v1764_v27 }
 0x67e   : > { %v1754_v21 = vsel %vm634_vm7, %v1747_v63, %v1749_v20  ;;  %v1755_v22 = vsel %vm634_vm7, %v1749_v20, %v1751_v12  ;;  %v1784_v26 = vpop.permute.xlu0 %1783  ;;  %v2709_v20 = vld [vmem:[%s3965_s9 + $0x8] sm:$0xf0] }
 0x67f   : > { %1838 = vrot.lane.b32.xlu1 %v1755_v22, %s4009_s26  ;;  %1836 = vrot.lane.b32.xlu0 %v1754_v21, %s4009_s26  ;;  %v1786_v39 = vsel %vm668_vm2, %v3709_v51, %v1784_v26  ;;  %vm2356_vm2 = vcmask 818180  }
 0x680   : > { %1844 = vrot.lane.b32.xlu2 %v1765_v23, %s4009_s26  ;;  %vm2357_vm3 = vmor %vm2356_vm2, %vm2355_vm1 }
 0x681   : > { %2358 = vst.msk [vmem:[#allocation5 + $0x4] sm:$0xff] %vm2357_vm3, %v2925_v44 }
 0x682   : > { %2359 = vst.msk [vmem:[#allocation5 + $0x10] sm:$0xff] %vm2357_vm3, %v2925_v44 }
 0x685   : > { %v1812_v25 = vpop.permute.xlu1 %1811 }
 0x686   : > { %v1753_v31 = vpop.permute.xlu0 %1752  ;;  %v1817_v33 = vsel %vm704_vm6, %v1812_v25, %v1814_v18 }
 0x687   : > { %1890 = vrot.lane.b32.xlu0 %v1808_v11, %s4009_s26  ;;  %1882 = vrot.lane.b32.xlu1 %v1800_v14, %s4009_s26  ;;  %v1756_v40 = vsel %vm634_vm7, %v1751_v12, %v1753_v31 }
 0x688   : > { %1874 = vrot.lane.b32.xlu2 %v1792_v19, %s4009_s26  ;;  %v2708_v19 = vor.u32 %v2851_v17, %v2707_v61 }
 0x68d   : > { %v1775_v28 = vpop.permute.xlu1 %1774 }
 0x68e   : > { %v1778_v29 = vsel %vm658_vm4, %v1773_v2, %v1775_v28  ;;  %v1816_v34 = vpop.permute.xlu0 %1815  ;;  %vm2362_vm4 = vcmask 814080  }
 0x68f   : > { %1856 = vrot.lane.b32.xlu1 %v1778_v29, %s4009_s26  ;;  %1866 = vrot.lane.b32.xlu0 %v1784_v26, %s4009_s26  ;;  %v1818_v36 = vsel %vm704_vm6, %v1814_v18, %v1816_v34  ;;  %v2850_v18 = vld [vmem:[%s3965_s9 + $0x4] sm:$0xf]  ;;  %vm2391_vm6 = vcmask 965632  }
 0x690   : > { %1848 = vrot.lane.b32.xlu2 %v1767_v30, %s4009_s26  ;;  %v2712_v21 = vor.u32 %v2850_v18, %v2709_v20 }
 0x697   : > { %1892 = vrot.lane.b32.xlu1 %v1812_v25, %s4009_s26  ;;  %1888 = vrot.lane.b32.xlu0 %v1810_v32, %s4009_s26 }
 0x698   : > { %1894 = vrot.lane.b32.xlu2 %v1817_v33, %s4009_s26 }
 0x69f   : > { %1880 = vrot.lane.b32.xlu0 %v1802_v35, %s4009_s26  ;;  %1896 = vrot.lane.b32.xlu1 %v1818_v36, %s4009_s26 }
 0x6a0   : > { %1858 = vrot.lane.b32.xlu2 %v1775_v28, %s4009_s26 }
 0x6a7   : > { %1872 = vrot.lane.b32.xlu0 %v1794_v62, %s4009_s26  ;;  %1842 = vrot.lane.b32.xlu1 %v1753_v31, %s4009_s26 }
 0x6a8   : > { %1834 = vrot.lane.b32.xlu2 %v3660_v56, %s4009_s26 }
 0x6af   : > { %1864 = vrot.lane.b32.xlu0 %v1786_v39, %s4009_s26  ;;  %2298 = vperm.xlu1 %2904, %v2294_v37  }
 0x6b0   : > { %2303 = vperm.xlu2 %2905, %v2295_v38  }
 0x6b1   : > { %v1887_v41 = vpop.permute.xlu2 %1886 }
 0x6b7   : > { %1840 = vrot.lane.b32.xlu0 %v1756_v40, %s4009_s26 }
 0x6b9   : > { %v1879_v43 = vpop.permute.xlu2 %1878 }
 0x6bf   : > { %1832 = vrot.lane.b32.xlu0 %v3645_v50, %s4009_s26 }
 0x6c1   : > { %v1871_v45 = vpop.permute.xlu2 %1870 }
 0x6c7   : > { %1850 = vrot.lane.b32.xlu0 %v1764_v27, %s4009_s26 }
 0x6c8   : > { %v1885_v46 = vpop.permute.xlu1 %1884 }
 0x6c9   : > { %v1921_v42 = vsel %vm800_vm8, %v1885_v46, %v1887_v41  ;;  %v1863_v53 = vpop.permute.xlu2 %1862 }
 0x6ca   : > { %1957 = vmatpush.bf16.msra.mxu0 %v1921_v42 }
 0x6cf   : > { %1898 = vrot.lane.b32.xlu0 %v1816_v34, %s4009_s26 }
 0x6d0   : > { %v1877_v47 = vpop.permute.xlu1 %1876 }
 0x6d1   : > { %v1918_v52 = vsel %vm800_vm8, %v1877_v47, %v1879_v43  ;;  %v1855_v57 = vpop.permute.xlu2 %1854 }
 0x6d2   : > { %1958 = vmatpush.bf16.msra.mxu0 %v1918_v52 }
 0x6d8   : > { %v1869_v54 = vpop.permute.xlu1 %1868 }
 0x6d9   : > { %v1915_v55 = vsel %vm800_vm8, %v1869_v54, %v1871_v45  ;;  %v2867_v54 = vld [vmem:[%s3971_s15 + $0x78] sm:$0xff] }
 0x6da   : > { %1959 = vmatpush.bf16.msra.mxu0 %v1915_v55  ;;  %v1845_v1 = vpop.permute.xlu2 %1844  ;;  %v2858_v55 = vld [vmem:[%s3971_s15 + $0x30] sm:$0xff] }
 0x6e0   : > { %v1861_v58 = vpop.permute.xlu1 %1860 }
 0x6e1   : > { %v1912_v59 = vsel %vm800_vm8, %v1861_v58, %v1863_v53  ;;  %v2857_v58 = vld [vmem:[%s3971_s15 + $0x28] sm:$0xff] }
 0x6e2   : > { %1960 = vmatpush.bf16.msra.mxu0 %v1912_v59  ;;  %v1875_v6 = vpop.permute.xlu2 %1874  ;;  %v2865_v59 = vld [vmem:[%s3971_s15 + $0x68] sm:$0xff] }
 0x6e8   : > { %v1853_v60 = vpop.permute.xlu1 %1852 }
 0x6e9   : > { %v1847_v63 = vpop.permute.xlu0 %1846  ;;  %v1909_v0 = vsel %vm800_vm8, %v1853_v60, %v1855_v57  ;;  %v2856_v60 = vld [vmem:[%s3971_s15 + $0x20] sm:$0xff] }
 0x6ea   : > { %1961 = vmatpush.bf16.msra.mxu0 %v1909_v0  ;;  %v1906_v2 = vsel %vm800_vm8, %v1845_v1, %v1847_v63  ;;  %v1849_v10 = vpop.permute.xlu2 %1848  ;;  %v2855_v0 = vld [vmem:[%s3971_s15 + $0x18] sm:$0xff] }
 0x6eb   : > { %v1907_v37 = vsel %vm800_vm8, %v1847_v63, %v1849_v10  ;;  %v2864_v63 = vld [vmem:[%s3971_s15 + $0x60] sm:$0xff]  ;;  %v2863_v1 = vld [vmem:[%s3971_s15 + $0x58] sm:$0xff] }
 0x6ee   : > { %1962 = vmatpush.bf16.msra.mxu0 %v1906_v2  ;;  %v2102_v2 = vld [vmem:[%s3971_s15 + $0xa0] sm:$0x3] }
 0x6f1   : > { %v1839_v4 = vpop.permute.xlu1 %1838  ;;  %v1837_v51 = vpop.permute.xlu0 %1836 }
 0x6f2   : > { %v1903_v5 = vsel %vm800_vm8, %v1837_v51, %v1839_v4  ;;  %v1895_v12 = vpop.permute.xlu2 %1894  ;;  %v2854_v51 = vld [vmem:[%s3971_s15 + $0x10] sm:$0xff] }
 0x6f3   : > { %1963 = vmatpush.bf16.msra.mxu0 %v1903_v5  ;;  %v2862_v5 = vld [vmem:[%s3971_s15 + $0x50] sm:$0xff] }
 0x6f7   : > { %1964 = vmatpush.bf16.msra.mxu0 %v1900_v7 }
 0x6f9   : > { %v1883_v8 = vpop.permute.xlu1 %1882  ;;  %v1891_v9 = vpop.permute.xlu0 %1890 }
 0x6fa   : > { %1965 = vmatmul.bf16.vlgmr.msra.gmra.mxu0 %v2708_v19  ;;  %v1859_v34 = vpop.permute.xlu2 %1858 }
 0x701   : > { %v1857_v11 = vpop.permute.xlu1 %1856  ;;  %v1867_v3 = vpop.permute.xlu0 %1866 }
 0x702   : > { %v1910_v35 = vsel %vm800_vm8, %v1855_v57, %v1857_v11  ;;  %v1911_v36 = vsel %vm800_vm8, %v1857_v11, %v1859_v34  ;;  %v2866_v57 = vld [vmem:[%s3971_s15 + $0x70] sm:$0xff]  ;;  %v2852_v11 = vld [vmem:[%s3971_s15] sm:$0xff] }
 0x709   : > { %v1893_v13 = vpop.permute.xlu1 %1892  ;;  %v1889_v14 = vpop.permute.xlu0 %1888 }
 0x70a   : > { %v1924_v15 = vsel %vm800_vm8, %v1893_v13, %v1895_v12  ;;  %v1922_v16 = vsel %vm800_vm8, %v1887_v41, %v1889_v14  ;;  %v1923_v49 = vsel %vm800_vm8, %v1889_v14, %v1891_v9  ;;  %v2861_v9 = vld [vmem:[%s3971_s15 + $0x48] sm:$0xff]  ;;  %v2868_v14 = vld [vmem:[%s3971_s15 + $0x80] sm:$0xff] }
 0x70b   : > { %1978 = vmatpush.bf16.msrb.mxu1 %v1924_v15  ;;  %1985 = vmatpush.bf16.msrb.mxu3 %v1922_v16  ;;  %v2869_v13 = vld [vmem:[%s3971_s15 + $0x88] sm:$0xff] }
 0x70e   : > { %2713 = vmatmul.msk.bf16.vlgmr.msrb.gmra.mxu1 %vm855_vm9, %v2712_v21 }
 0x70f   : > { %2013 = vmatpush.bf16.msra.mxu1 %v1923_v49 }
 0x711   : > { %v1897_v22 = vpop.permute.xlu1 %1896  ;;  %v1881_v23 = vpop.permute.xlu0 %1880 }
 0x712   : > { %v1925_v25 = vsel %vm800_vm8, %v1895_v12, %v1897_v22  ;;  %v1919_v26 = vsel %vm800_vm8, %v1879_v43, %v1881_v23  ;;  %v1920_v27 = vsel %vm800_vm8, %v1881_v23, %v1883_v8  ;;  %v2853_v8 = vld [vmem:[%s3971_s15 + $0x8] sm:$0xff]  ;;  %v2870_v12 = vld [vmem:[%s3971_s15 + $0x90] sm:$0xff] }
 0x713   : > { %1986 = vmatpush.bf16.msrb.mxu3 %v1919_v26  ;;  %2006 = vmatpush.bf16.msra.mxu2 %v1925_v25 }
 0x714   : > { %2014 = vmatpush.bf16.msra.mxu1 %v1920_v27 }
 0x716   : > { %2714 = vmatmul.msk.bf16.vlgmr.msra.gmra.mxu2 %vm855_vm9, %v2712_v21 }
 0x719   : > { %v1873_v28 = vpop.permute.xlu0 %1872  ;;  %v1843_v46 = vpop.permute.xlu1 %1842 }
 0x71a   : > { %v1916_v29 = vsel %vm800_vm8, %v1871_v45, %v1873_v28  ;;  %v1917_v30 = vsel %vm800_vm8, %v1873_v28, %v1875_v6  ;;  %v1835_v45 = vpop.permute.xlu2 %1834 }
 0x71b   : > { %1987 = vmatpush.bf16.msrb.mxu3 %v1916_v29  ;;  %2015 = vmatpush.bf16.msra.mxu1 %v1917_v30 }
 0x721   : > { %v1865_v31 = vpop.permute.xlu0 %1864 }
 0x722   : > { %v1913_v32 = vsel %vm800_vm8, %v1863_v53, %v1865_v31  ;;  %v1914_v33 = vsel %vm800_vm8, %v1865_v31, %v1867_v3  ;;  %v2860_v3 = vld [vmem:[%s3971_s15 + $0x40] sm:$0xff] }
 0x723   : > { %1988 = vmatpush.bf16.msrb.mxu3 %v1913_v32  ;;  %2016 = vmatpush.bf16.msra.mxu1 %v1914_v33 }
 0x727   : > { %1989 = vmatpush.bf16.msrb.mxu3 %v1910_v35  ;;  %2017 = vmatpush.bf16.msra.mxu1 %v1911_v36 }
 0x729   : > { %v1841_v62 = vpop.permute.xlu0 %1840 }
 0x72a   : > { %v1904_v38 = vsel %vm800_vm8, %v1839_v4, %v1841_v62  ;;  %v1905_v42 = vsel %vm800_vm8, %v1841_v62, %v1843_v46  ;;  %v2184_v4 = vunpack.c.l.b16 %v2102_v2 }
 0x72b   : > { %1990 = vmatpush.bf16.msrb.mxu3 %v1907_v37 }
 0x72c   : > { %v2205_v6 = vpack.c.b16 %v2184_v4, %v2184_v4 }
 0x72e   : > { %v2235_v7 = vsel %vm2233_vm15, %v2205_v6, 0 }
 0x72f   : > { %1991 = vmatpush.bf16.msrb.mxu3 %v1904_v38 }
 0x731   : > { %v1833_v39 = vpop.permute.xlu0 %1832 }
 0x732   : > { %v1901_v40 = vsel %vm800_vm8, %v3735_v24, %v1833_v39  ;;  %v1902_v53 = vsel %vm800_vm8, %v1833_v39, %v1835_v45  ;;  %v2859_v24 = vld [vmem:[%s3971_s15 + $0x38] sm:$0xff] }
 0x733   : > { %1992 = vmatpush.bf16.msrb.mxu3 %v1901_v40  ;;  %2237 = vmatpush.bf16.msrb.mxu2 %v2859_v24  ;;  %v2299_v24 = vpop.permute.xlu1 %2298 }
 0x736   : > { %1993 = vmatmul.bf16.vlgmr.msrb.gmra.mxu3 %v2708_v19 }
 0x737   : > { %2256 = vmatpush.bf16.msra.mxu3 %v2867_v54  ;;  %2238 = vmatpush.bf16.msrb.mxu2 %v2858_v55 }
 0x739   : > { %v1851_v41 = vpop.permute.xlu0 %1850 }
 0x73a   : > { %v1908_v43 = vsel %vm800_vm8, %v1849_v10, %v1851_v41  ;;  %v2871_v10 = vld [vmem:[%s3971_s15 + $0x98] sm:$0xff] }
 0x73b   : > { %2018 = vmatpush.bf16.msra.mxu1 %v1908_v43  ;;  %2257 = vmatpush.bf16.msra.mxu3 %v2866_v57 }
 0x73c   : > { %2239 = vmatpush.bf16.msrb.mxu2 %v2857_v58 }
 0x73f   : > { %2019 = vmatpush.bf16.msra.mxu1 %v1905_v42  ;;  %2258 = vmatpush.bf16.msra.mxu3 %v2865_v59 }
 0x740   : > { %2240 = vmatpush.bf16.msrb.mxu2 %v2856_v60 }
 0x741   : > { %v1899_v47 = vpop.permute.xlu0 %1898 }
 0x742   : > { %v1926_v52 = vsel %vm800_vm8, %v1897_v22, %v1899_v47  ;;  %vm2541_vm8 = vcmask 7168  }
 0x743   : > { %2020 = vmatpush.bf16.msra.mxu1 %v1902_v53  ;;  %2034 = vmatpush.bf16.msrb.mxu0 %v1926_v52 }
 0x744   : > { %2259 = vmatpush.bf16.msra.mxu3 %v2864_v63  ;;  %2241 = vmatpush.bf16.msrb.mxu2 %v2855_v0  ;;  %v2304_v63 = vpop.permute.xlu2 %2303 }
 0x746   : > { %2021 = vmatmul.bf16.vlgmr.msra.gmra.mxu1 %v2708_v19  ;;  %2715 = vmatmul.msk.bf16.vlgmr.msrb.gmra.mxu0 %vm855_vm9, %v2712_v21 }
 0x747   : > { %2278 = vmatpush.bf16.msra.mxu0 %v2235_v7 }
 0x748   : > { %2260 = vmatpush.bf16.msra.mxu3 %v2863_v1  ;;  %2242 = vmatpush.bf16.msrb.mxu2 %v2854_v51 }
 0x74b   : > { %2279 = vmatpush.bf16.msra.mxu0 %v2871_v10 }
 0x74c   : > { %2261 = vmatpush.bf16.msra.mxu3 %v2862_v5  ;;  %2243 = vmatpush.bf16.msrb.mxu2 %v2853_v8 }
 0x74f   : > { %2280 = vmatpush.bf16.msra.mxu0 %v2870_v12 }
 0x750   : > { %2262 = vmatpush.bf16.msra.mxu3 %v2861_v9  ;;  %2244 = vmatpush.bf16.msrb.mxu2 %v2852_v11 }
 0x753   : > { %2281 = vmatpush.bf16.msra.mxu0 %v2869_v13 }
 0x754   : > { %2263 = vmatpush.bf16.msra.mxu3 %v2860_v3 }
 0x757   : > { %2282 = vmatpush.bf16.msra.mxu0 %v2868_v14 }
 0x777   : > { %v1966_v15 = vpop.f32.mrf.mxu0 }
 0x77f   : > { %v1968_v17 = vpop.f32.mrf.mxu0 }
 0x78b   : > { %v1980_v16 = vpop.f32.mrf.mxu1 }
 0x78c   : > { %v1981_v20 = vadd.f32 %v1980_v16, %v1966_v15 }
 0x793   : > { %v1982_v18 = vpop.f32.mrf.mxu1 }
 0x794   : > { %v1983_v23 = vadd.f32 %v1982_v18, %v1968_v17  ;;  %v2872_v18 = vld [vmem:[%s3969_s13] sm:$0xff] }
 0x799   : > { %v2008_v49 = vpop.f32.mrf.mxu2 }
 0x7a1   : > { %v2010_v21 = vpop.f32.mrf.mxu2 }
 0x7b9   : > { %v1994_v61 = vpop.f32.mrf.mxu3 }
 0x7ba   : > { %v2009_v19 = vadd.f32 %v2008_v49, %v1994_v61  ;;  %v2805_v49 = vld [vmem:[#allocation5] sm:$0xf]  ;;  %v2874_v61 = vld [vmem:[#allocation5 + $0x8] sm:$0xf0] }
 0x7bb   : > { %v2806_v17 = vor.u32 %v2874_v61, %v2805_v49 }
 0x7bc   : > { %v2041_v25 = vpack.c.bf16 %v2009_v19, %v1981_v20 }
 0x7be   : > { %v2049_v30 = vunpack.c.l.b16 %v2041_v25  ;;  %v2050_v31 = vunpack.c.h.b16 %v2041_v25 }
 0x7c1   : > { %v1996_v22 = vpop.f32.mrf.mxu3 }
 0x7c2   : > { %v2011_v26 = vadd.f32 %v2010_v21, %v1996_v22 }
 0x7c3   : > { %v2022_v27 = vpop.f32.mrf.mxu1  ;;  %v2036_v28 = vpop.f32.mrf.mxu0 }
 0x7c4   : > { %v2043_v29 = vpack.c.bf16 %v2011_v26, %v1983_v23  ;;  %v2037_v36 = vadd.f32 %v2036_v28, %v2022_v27 }
 0x7c6   : > { %v2052_v32 = vunpack.c.l.b16 %v2043_v29  ;;  %v2053_v33 = vunpack.c.h.b16 %v2043_v29  ;;  %v2042_v38 = vpack.c.bf16 %v2037_v36, %v2037_v36  ;;  %v2404_v36 = vld [vmem:[%s3968_s12 + $0x8] sm:$0xff] }
 0x7c8   : > { %v2055_v34 = vpack.c.b16 %v2052_v32, %v2049_v30  ;;  %v2056_v35 = vpack.c.b16 %v2053_v33, %v2050_v31  ;;  %v2051_v41 = vunpack.c.l.b16 %v2042_v38  ;;  %v2403_v33 = vld [vmem:[%s3968_s12] sm:$0xff] }
 0x7ca   : > { %2245 = vmatmul.bf16.vlgmr.msrb.gmra.mxu2 %v2055_v34  ;;  %2264 = vmatmul.bf16.vlgmr.msra.gmra.mxu3 %v2056_v35  ;;  %v2320_v35 = vld [vmem:[%s3970_s14 + $0x8] sm:$0xff] }
 0x7cb   : > { %v2024_v62 = vpop.f32.mrf.mxu1  ;;  %v2038_v37 = vpop.f32.mrf.mxu0 }
 0x7cc   : > { %v2039_v39 = vadd.f32 %v2038_v37, %v2024_v62  ;;  %v2319_v62 = vld [vmem:[%s3970_s14] sm:$0xff] }
 0x7ce   : > { %v2044_v40 = vpack.c.bf16 %v2039_v39, %v2039_v39 }
 0x7d0   : > { %v2054_v43 = vunpack.c.l.b16 %v2044_v40 }
 0x7d2   : > { %v2057_v46 = vpack.c.b16 %v2054_v43, %v2051_v41 }
 0x7d4   : > { %2796 = vmatmul.msk.bf16.vlgmr.msra.gmra.mxu0 %vm2226_vm0, %v2057_v46  ;;  %v2875_v46 = vld [vmem:[%s3967_s11 + $0x4] sm:$0xf] }
 0x7da   : > { %2250 = vmatmul.bf16.gmra.mxu2 %v3643_v48  ;;  %2269 = vmatmul.bf16.gmra.mxu3 %v3645_v50  ;;  %v2906_v48 = vld [vmem:[%s3972_s16] ss:$0 sm:$0xff] }
 0x7e4   : > { %2797 = vmatmul.msk.bf16.gmra.mxu0 %vm2226_vm0, %v3660_v56 }
 0x84d   : > { %v2246_v42 = vpop.f32.mrf.mxu2  ;;  %v2265_v45 = vpop.f32.mrf.mxu3 }
 0x84e   : > { %v2266_v47 = vadd.f32 %v2265_v45, %v2246_v42  ;;  %v2815_v42 = vld [vmem:[%s3967_s11 + $0x8] sm:$0xf0] }
 0x851   : > { %v2284_v52 = vpop.f32.mrf.mxu0 }
 0x852   : > { %v2285_v53 = vadd.f32 %v2284_v52, %v2266_v47  ;;  %v2818_v52 = vor.u32 %v2875_v46, %v2815_v42 }
 0x854   : > { %v2306_v54 = vadd.f32 %v2299_v24, %v2285_v53 }
 0x855   : > { %v2248_v50 = vpop.f32.mrf.mxu2  ;;  %v2267_v56 = vpop.f32.mrf.mxu3 }
 0x856   : > { %v2308_v55 = vmax.f32 %v2306_v54, 0.0  ;;  %v2268_v58 = vadd.f32 %v2267_v56, %v2248_v50 }
 0x858   : > { %v2314_v57 = vmul.f32 %v2906_v48, %v2308_v55  ;;  %v2813_v55 = vld [vmem:[%s3967_s11] sm:$0xf] }
 0x859   : > { %v2286_v59 = vpop.f32.mrf.mxu0 }
 0x85a   : > { %v2360_v60 = vpack.c.bf16 %v2314_v57, %v2314_v57  ;;  %v2287_v44 = vadd.f32 %v2286_v59, %v2268_v58  ;;  %v2876_v57 = vld [vmem:[%s3967_s11 + $0x4] sm:$0xf0] }
 0x85c   : > { %2363 = vst.msk [vmem:[#allocation5 + $0x4] sm:$0xf] %vm2362_vm4, %v2360_v60  ;;  %v2307_v0 = vadd.f32 %v2304_v63, %v2287_v44  ;;  %v2814_v44 = vor.u32 %v2876_v57, %v2813_v55 }
 0x85d   : > { %v2251_v1 = vpop.f32.mrf.mxu2  ;;  %v2270_v2 = vpop.f32.mrf.mxu3 }
 0x85e   : > { %v2309_v4 = vmax.f32 %v2307_v0, 0.0  ;;  %v2271_v9 = vadd.f32 %v2270_v2, %v2251_v1 }
 0x860   : > { %v2315_v51 = vmul.f32 %v2906_v48, %v2309_v4 }
 0x861   : > { %v2289_v5 = vpop.f32.mrf.mxu0 }
 0x862   : > { %v2361_v6 = vpack.c.bf16 %v2315_v51, %v2315_v51  ;;  %v2290_v3 = vadd.f32 %v2289_v5, %v2271_v9  ;;  %v2907_v9 = vld [vmem:[%s3972_s16] ss:$0 sm:$0xff] }
 0x863   : > { %v2873_v13 = vld [vmem:[#allocation5 + $0x4] sm:$0xf] }
 0x864   : > { %2364 = vst.msk [vmem:[#allocation5 + $0x10] sm:$0xf] %vm2362_vm4, %v2361_v6 }
 0x865   : > { %v2253_v7 = vpop.f32.mrf.mxu2  ;;  %v2272_v8 = vpop.f32.mrf.mxu3 }
 0x866   : > { %v2273_v10 = vadd.f32 %v2272_v8, %v2253_v7 }
 0x869   : > { %v2291_v11 = vpop.f32.mrf.mxu0 }
 0x86a   : > { %v2292_v12 = vadd.f32 %v2291_v11, %v2273_v10 }
 0x86b   : > { %v2807_v14 = vld [vmem:[#allocation5 + $0xc] sm:$0xf0] }
 0x86c   : > { %v2318_v15 = vpack.c.bf16 %v2292_v12, %v2290_v3  ;;  %v2810_v16 = vor.u32 %v2873_v13, %v2807_v14 }
 0x86e   : > { %2346 = vmatpush.bf16.msrb.mxu1 %v2318_v15  ;;  %2395 = vrot.lane.b32.xlu2 %v2810_v16, %s2926_s20 }
 0x86f   : > { %2397 = vrot.lane.b32.xlu1 %v2810_v16, %s4010_s21  ;;  %2399 = vrot.lane.b32.xlu0 %v2810_v16, %s2927_s28 }
 0x871   : > { %2802 = vmatmul.msk.bf16.vlgmr.msrb.gmra.mxu1 %vm855_vm9, %v2872_v18 }
 0x876   : > { %2389 = vrot.lane.b32.xlu2 %v2810_v16, %s2928_s2 }
 0x877   : > { %2387 = vrot.lane.b32.xlu1 %v2806_v17, %s2928_s2  ;;  %2393 = vrot.lane.b32.xlu0 %v2810_v16, %s2929_s3 }
 0x87e   : > { %2377 = vrot.lane.b32.xlu2 %v2806_v17, %s4015_s25 }
 0x87f   : > { %2384 = vrot.lane.b32.xlu1 %v2810_v16, %s4014_s1  ;;  %2382 = vrot.lane.b32.xlu0 %v2806_v17, %s4014_s1 }
 0x887   : > { %2401 = vrot.lane.b32.xlu1 %v2810_v16, %s2930_s4  ;;  %2379 = vrot.lane.b32.xlu0 %v2810_v16, %s4015_s25  ;;  %s2827_s4 = sshll.u32 %s4017_s30, 4 }
 0x888   : > { %s602_s25 = scalar_lea.vmem %s3975_s19, %s2827_s4 }
 0x8c8   : > { %v2396_v19 = vpop.permute.xlu2 %2395 }
 0x8c9   : > { %2442 = vrot.lane.b32.xlu1 %v2396_v19, %s2931_s24 }
 0x8d0   : > { %v2390_v20 = vpop.permute.xlu2 %2389 }
 0x8d1   : > { %2438 = vrot.lane.b32.xlu1 %v2390_v20, %s2931_s24 }
 0x8d8   : > { %v2378_v30 = vpop.permute.xlu2 %2377 }
 0x8e1   : > { %v2398_v21 = vpop.permute.xlu1 %2397  ;;  %v2400_v22 = vpop.permute.xlu0 %2399 }
 0x8e2   : > { %2444 = vrot.lane.b32.xlu0 %v2398_v21, %s2931_s24  ;;  %2446 = vrot.lane.b32.xlu2 %v2400_v22, %s2931_s24 }
 0x8e9   : > { %v2388_v23 = vpop.permute.xlu1 %2387  ;;  %v2394_v25 = vpop.permute.xlu0 %2393 }
 0x8ea   : > { %v2392_v26 = vsel %vm2391_vm6, %v2388_v23, %v2390_v20  ;;  %2440 = vrot.lane.b32.xlu2 %v2394_v25, %s2931_s24 }
 0x8eb   : > { %2436 = vrot.lane.b32.xlu0 %v2392_v26, %s2931_s24  ;;  %v2822_v26 = vld [vmem:[%s3973_s17] sm:$0xf] }
 0x8ee   : > { %v2348_v63 = vpop.f32.mrf.mxu1 }
 0x8f1   : > { %v2385_v27 = vpop.permute.xlu1 %2384  ;;  %v2383_v28 = vpop.permute.xlu0 %2382 }
 0x8f2   : > { %v2386_v29 = vsel %vm646_vm5, %v2383_v28, %v2385_v27  ;;  %vm2450_vm5 = vcmask 89088  }
 0x8f3   : > { %2434 = vrot.lane.b32.xlu0 %v2385_v27, %s2931_s24  ;;  %2432 = vrot.lane.b32.xlu2 %v2386_v29, %s2931_s24  ;;  %v2877_v27 = vld [vmem:[%s3973_s17] sm:$0x10] }
 0x8f4   : > { %v2823_v29 = vor.u32 %v2877_v27, %v2822_v26 }
 0x8f6   : > { %v2350_v0 = vpop.f32.mrf.mxu1 }
 0x8f9   : > { %v2380_v31 = vpop.permute.xlu0 %2379  ;;  %v2402_v34 = vpop.permute.xlu1 %2401 }
 0x8fa   : > { %v2381_v32 = vsel %vm634_vm7, %v2378_v30, %v2380_v31  ;;  %vm2505_vm7 = vcmask 818176   ;;  %v2517_v30 = vld [vmem:[%s3974_s18] sm:$0xff] }
 0x8fb   : > { %2424 = vrot.lane.b32.xlu0 %v2806_v17, %s2931_s24  ;;  %2428 = vrot.lane.b32.xlu1 %v2381_v32, %s2931_s24 }
 0x8fc   : > { %2430 = vrot.lane.b32.xlu2 %v2380_v31, %s2931_s24 }
 0x903   : > { %2407 = vperm.xlu0 %2903, %v2403_v33   ;;  %2426 = vrot.lane.b32.xlu1 %v2810_v16, %s2931_s24  ;;  %v2518_v33 = vld [vmem:[%s3974_s18 + $0x8] sm:$0x3] }
 0x904   : > { %2448 = vrot.lane.b32.xlu2 %v2402_v34, %s2931_s24 }
 0x90b   : > { %2328 = vperm.xlu0 %2903, %v2320_v35   ;;  %2412 = vperm.xlu1 %2904, %v2404_v36  }
 0x90c   : > { %2323 = vperm.xlu2 %2905, %v2319_v62  }
 0x93b   : > { %v2443_v41 = vpop.permute.xlu1 %2442 }
 0x93c   : > { %v2447_v37 = vpop.permute.xlu2 %2446 }
 0x93d   : > { %2467 = vmatpush.bf16.msra.mxu2 %v2447_v37 }
 0x943   : > { %v2439_v53 = vpop.permute.xlu1 %2438 }
 0x944   : > { %v2441_v38 = vpop.permute.xlu2 %2440 }
 0x94d   : > { %v2433_v39 = vpop.permute.xlu2 %2432 }
 0x954   : > { %v2445_v40 = vpop.permute.xlu0 %2444 }
 0x955   : > { %2468 = vmatpush.bf16.msra.mxu2 %v2445_v40 }
 0x956   : > { %v2431_v43 = vpop.permute.xlu2 %2430 }
 0x959   : > { %2469 = vmatpush.bf16.msra.mxu2 %v2443_v41 }
 0x95d   : > { %2470 = vmatpush.bf16.msra.mxu2 %v2441_v38  ;;  %v2437_v45 = vpop.permute.xlu0 %2436 }
 0x95e   : > { %v2449_v47 = vpop.permute.xlu2 %2448  ;;  %v2454_v24 = vsel %vm2450_vm5, %v2437_v45, %v2439_v53 }
 0x95f   : > { %2488 = vmatpush.bf16.msra.mxu1 %v2449_v47 }
 0x961   : > { %2471 = vmatpush.bf16.msra.mxu2 %v2454_v24 }
 0x962   : > { %2819 = vmatmul.msk.bf16.vlgmr.msra.gmra.mxu1 %vm855_vm9, %v2818_v52 }
 0x965   : > { %v2435_v54 = vpop.permute.xlu0 %2434 }
 0x966   : > { %v2453_v48 = vsel %vm2450_vm5, %v2433_v39, %v2435_v54  ;;  %v2324_v2 = vpop.permute.xlu2 %2323 }
 0x967   : > { %2472 = vmatpush.bf16.msra.mxu2 %v2453_v48  ;;  %v2349_v6 = vadd.f32 %v2348_v63, %v2324_v2 }
 0x96d   : > { %v2429_v50 = vpop.permute.xlu1 %2428  ;;  %v2425_v58 = vpop.permute.xlu0 %2424 }
 0x96e   : > { %v2452_v56 = vsel %vm2450_vm5, %v2429_v50, %v2431_v43 }
 0x96f   : > { %2473 = vmatpush.bf16.msra.mxu2 %v2452_v56 }
 0x975   : > { %v2427_v59 = vpop.permute.xlu1 %2426  ;;  %v2408_v1 = vpop.permute.xlu0 %2407 }
 0x976   : > { %v2451_v60 = vsel %vm2450_vm5, %v2425_v58, %v2427_v59 }
 0x977   : > { %2474 = vmatpush.bf16.msra.mxu2 %v2451_v60 }
 0x97a   : > { %2475 = vmatmul.bf16.vlgmr.msra.gmra.mxu2 %v2814_v44 }
 0x97d   : > { %v2413_v10 = vpop.permute.xlu1 %2412  ;;  %v2329_v3 = vpop.permute.xlu0 %2328 }
 0x97e   : > { %v2351_v16 = vadd.f32 %v2350_v0, %v2329_v3 }
 0x9df   : > { %v2490_v4 = vpop.f32.mrf.mxu1 }
 0x9e7   : > { %v2492_v15 = vpop.f32.mrf.mxu1 }
 0x9fd   : > { %v2476_v51 = vpop.f32.mrf.mxu2 }
 0x9fe   : > { %v2477_v5 = vadd.f32 %v2476_v51, %v2408_v1 }
 0xa00   : > { %v2491_v7 = vadd.f32 %v2490_v4, %v2477_v5 }
 0xa02   : > { %v2495_v8 = vadd.f32 %v2491_v7, %v2349_v6 }
 0xa04   : > { %v2497_v11 = vmax.f32 %v2495_v8, 0.0 }
 0xa05   : > { %v2478_v12 = vpop.f32.mrf.mxu2 }
 0xa06   : > { %v2479_v13 = vadd.f32 %v2478_v12, %v2413_v10  ;;  %v2503_v14 = vmul.f32 %v2907_v9, %v2497_v11 }
 0xa08   : > { %v2493_v49 = vadd.f32 %v2492_v15, %v2479_v13  ;;  %v2506_v61 = vsel %vm2505_vm7, %v2503_v14, 0.0 }
 0xa09   : > { %2507 = vadd.xlane.f32.xlu1 %v2506_v61 }
 0xa0a   : > { %v2496_v17 = vadd.f32 %v2493_v49, %v2351_v16 }
 0xa0c   : > { %v2498_v18 = vmax.f32 %v2496_v17, 0.0 }
 0xa0e   : > { %v2504_v19 = vmul.f32 %v2907_v9, %v2498_v18 }
 0xa10   : > { %v2509_v20 = vsel %vm2505_vm7, %v2504_v19, 0.0 }
 0xa11   : > { %2510 = vadd.xlane.f32.xlu2 %v2509_v20 }
 0xa7c   : > { %v2508_v21 = vpop.xlane.xlu1 %2507 }
 0xa7d   : > { %v2512_v23 = vmul.f32 0.015625, %v2508_v21 }
 0xa84   : > { %v2511_v22 = vpop.xlane.xlu2 %2510 }
 0xa85   : > { %v2513_v25 = vmul.f32 0.015625, %v2511_v22 }
 0xa87   : > { %v2516_v28 = vpack.c.bf16 %v2513_v25, %v2512_v23 }
 0xa89   : > { %2534 = vmatpush.bf16.msrb.mxu0 %v2516_v28 }
 0xa8c   : > { %2824 = vmatmul.msk.bf16.vlgmr.msrb.gmra.mxu0 %vm855_vm9, %v2823_v29 }
 0xb09   : > { %v2536_v31 = vpop.f32.mrf.mxu0 }
 0xb0a   : > { %v2537_v32 = vadd.f32 %v2536_v31, %v2517_v30 }
 0xb0c   : > { %2542 = vst.msk [vmem:[%s602_s25] sm:$0xff] %vm2541_vm8, %v2537_v32 }
 0xb11   : > { %v2538_v34 = vpop.f32.mrf.mxu0 }
 0xb12   : > { %v2539_v35 = vadd.f32 %v2538_v34, %v2518_v33 }
 0xb14   : > { %2544 = vst.msk [vmem:[%s602_s25 + $0x8] sm:$0x3] %vm2543_vm10, %v2539_v35 }
 0xb15 PF: > { %s29_s0 = sadd.s32 1, %s2914_s0  }
 0xb16   : > { %p26_p4 = scmp.ge.s32.totalorder %s29_s0, 4  }
 0xb18   :  { %28 = sbr.rel (!%p26_p4) target bundleno = 6 (0x6), region = 126 }

</bundles_post_ra>
